<compile_context>
chip_gen: v7x
topology: tpu7x:2x2x1
jax: 0.10.0
libtpu: 0.0.40
codegen_flags: <defaults>
</compile_context>

<pallas_src>
import numpy as np
import jax
import jax.numpy as jnp
from jax.experimental import pallas as pl
from jax.experimental.pallas import tpu as pltpu

# ----------------------- small, self-consistent sizes ------------------------
DIM = 32              # latent / channel width      (PyTorch default: 128)
START_SIZE = 4        # ConvUpsample start size
N_FRAMES = 16         # ConvUpsample end size       (PyTorch default: 64)
N_NOISE_FRAMES = 2 * N_FRAMES
N_SAMPLES = 1024      # audio samples (default arg `2 * 15` is a typo for 2**15)
SPF = N_SAMPLES // N_NOISE_FRAMES       # noise samples per frame
N_COEFFS = SPF // 2 + 1                 # rfft bins per frame
MASK_AFTER = 1
LEAKY_SLOPE = 0.2
SLAB_W = 128                            # lane width of the packed constant slab

N_UP_CT = int(round(np.log2(N_FRAMES // START_SIZE)))       # 2
N_NM_CT = int(round(np.log2(N_NOISE_FRAMES // N_FRAMES)))   # 1
P_FINAL = N_NOISE_FRAMES // START_SIZE                       # 8 phases at the end

assert N_SAMPLES == N_NOISE_FRAMES * SPF
assert MASK_AFTER == 1      # DC-only epilogue below relies on the module's mask_after=1
assert DIM == SPF           # lets nm_final and the noise reducer share one slab block


# --------------------- host-side weight re-layout helpers ---------------------
def _round8(n):
    return (n + 7) // 8 * 8


def _block_diag(w, p):
    """Repeat a (Cin, Cout) matrix p times along the diagonal -> (p*Cin, p*Cout)."""
    cin, cout = w.shape
    out = np.zeros((p * cin, p * cout), np.float32)
    for q in range(p):
        out[q * cin:(q + 1) * cin, q * cout:(q + 1) * cout] = w
    return out


def _phase_convt_weight(w, p):
    """PyTorch ConvTranspose1d(K=4, stride=2, pad=1) weight (Cin, Cout, 4) ->
    phase-major matmul weight (3*p*Cin, 2*p*Cout).

    Input activation H is (R, p*Cin), phase-major (frame = p*m + q), presented to the
    matmul as the im2col [H[m+1] | H[m] | H[m-1]].  Output is (R, 2*p*Cout) with
    frame = 2*p*m + q'.  Uses:  even[p'] = x[p']·w1 + x[p'-1]·w3,
                                odd [p'] = x[p'+1]·w0 + x[p']·w2.
    """
    w = np.asarray(w, np.float32)
    cin, cout, _ = w.shape
    W = np.zeros((3 * p * cin, 2 * p * cout), np.float32)

    def rb(tap, q):            # row offset of input block: tap 0 -> H[m+1], 1 -> H[m], 2 -> H[m-1]
        return (tap * p + q) * cin

    for q in range(p):
        co = (2 * q) * cout                                     # even output phase
        W[rb(1, q):rb(1, q) + cin, co:co + cout] += w[:, :, 1]  # x[p']   . w1
        src = rb(1, q - 1) if q > 0 else rb(2, p - 1)
        W[src:src + cin, co:co + cout] += w[:, :, 3]            # x[p'-1] . w3
        co = (2 * q + 1) * cout                                 # odd output phase
        W[rb(1, q):rb(1, q) + cin, co:co + cout] += w[:, :, 2]  # x[p']   . w2
        src = rb(1, q + 1) if q < p - 1 else rb(0, 0)
        W[src:src + cin, co:co + cout] += w[:, :, 0]            # x[p'+1] . w0
    return W


def _phase_conv3_weight(w, p):
    """PyTorch Conv1d(K=3, stride=1, pad=1) weight (Cout, Cin, 3) ->
    phase-major matmul weight (3*p*Cin, p*Cout).  y[p'] = x[p'-1]w0 + x[p']w1 + x[p'+1]w2."""
    w = np.asarray(w, np.float32)
    cout, cin, _ = w.shape
    W = np.zeros((3 * p * cin, p * cout), np.float32)

    def rb(tap, q):
        return (tap * p + q) * cin

    for q in range(p):
        co = q * cout
        W[rb(1, q):rb(1, q) + cin, co:co + cout] += w[:, :, 1].T      # x[p']   . w1
        src = rb(1, q + 1) if q < p - 1 else rb(0, 0)
        W[src:src + cin, co:co + cout] += w[:, :, 2].T                # x[p'+1] . w2
        src = rb(1, q - 1) if q > 0 else rb(2, p - 1)
        W[src:src + cin, co:co + cout] += w[:, :, 0].T                # x[p'-1] . w0
    return W


# --------------------------- parameters (PyTorch layout) ----------------------
def make_params(key):
    def u(k, shape):                        # make_initializer(0.1) ~ U(-0.1, 0.1)
        return jax.random.uniform(k, shape, jnp.float32, -0.1, 0.1)

    keys = iter(jax.random.split(key, 32))
    p = {'latent': jax.random.normal(next(keys), (1, DIM), jnp.float32)}

    # ConvUpsample(dim, dim, 4, n_frames, mode='learned', out_channels=dim)
    p['up_lin_w'] = u(next(keys), (DIM * START_SIZE, DIM))      # nn.Linear (out, in)
    p['up_lin_b'] = u(next(keys), (DIM * START_SIZE,))
    p['up_ct'] = [(u(next(keys), (DIM, DIM, 4)), u(next(keys), (DIM,)))
                  for _ in range(N_UP_CT)]
    p['up_final_w'] = u(next(keys), (DIM, DIM, 3))              # Conv1d(dim, dim, 3, 1, 1)
    p['up_final_b'] = u(next(keys), (DIM,))

    # NoiseModel(dim, n_frames, n_frames*2, n_samples, dim, squared=True, mask_after=1)
    p['nm_init_w'] = u(next(keys), (DIM, DIM, 1))
    p['nm_init_b'] = u(next(keys), (DIM,))
    p['nm_ct'] = [(u(next(keys), (DIM, DIM, 4)), u(next(keys), (DIM,)))
                  for _ in range(N_NM_CT)]
    p['nm_final_w'] = u(next(keys), (N_COEFFS, DIM, 1))
    p['nm_final_b'] = u(next(keys), (N_COEFFS,))
    return p


# --------------------- one-time packing into a single slab --------------------
def prepare_params(p):
    """Packs every weight / constant into ONE (R, 128) f32 slab + a static layout."""
    blocks, layout = [], {}
    row = 0

    def add(name, arr):
        nonlocal row
        arr = np.asarray(arr, np.float32)
        if arr.ndim == 1:
            arr = arr[None, :]
        assert arr.ndim == 2 and arr.shape[1] <= SLAB_W, (name, arr.shape)
        pad = np.zeros((_round8(arr.shape[0]), SLAB_W), np.float32)
        pad[:arr.shape[0], :arr.shape[1]] = arr
        layout[name] = (row, arr.shape[0], arr.shape[1])   # static (row0, rows, cols)
        blocks.append(pad)
        row += pad.shape[0]

    def add_wide(name, arr):                                # 128 < width <= 256: two halves
        arr = np.asarray(arr, np.float32)
        if arr.ndim == 1:
            arr = arr[None, :]
        assert arr.shape[1] <= 2 * SLAB_W, (name, arr.shape)
        add(name + '_lo', arr[:, :SLAB_W])
        add(name + '_hi', arr[:, SLAB_W:])

    latent = np.asarray(p['latent'], np.float32)                       # (1, DIM)

    # --- ConvUpsample Linear, emitted directly frame-major: h0 = lat4 @ lin_w + lin_b
    # PyTorch reshapes the Linear output to (channels, start_size): unit index = c*START + s.
    add('lat4', _block_diag(latent, START_SIZE))                       # (4, 4*DIM)
    lw = np.asarray(p['up_lin_w'], np.float32)
    wst = np.zeros((START_SIZE * DIM, DIM), np.float32)
    for s in range(START_SIZE):
        wst[s * DIM:(s + 1) * DIM, :] = lw[np.arange(DIM) * START_SIZE + s, :].T
    add('lin_w', wst)                                                  # (4*DIM, DIM)
    add('lin_b', np.asarray(p['up_lin_b'], np.float32).reshape(DIM, START_SIZE).T)

    # --- ConvTranspose1d stack (phase-major weights; phases double per layer)
    ph = 1
    for li, (w, b) in enumerate(p['up_ct']):
        add(f'up{li}_w', _phase_convt_weight(w, ph))
        add(f'up{li}_b', np.tile(np.asarray(b, np.float32), 2 * ph))
        ph *= 2

    # --- ConvUpsample final Conv1d(3) composed with NoiseModel's 1x1 input conv
    #     (adjacent affine layers, no activation in between -> exact prep-time fusion)
    w3p = _phase_conv3_weight(p['up_final_w'], ph)
    b3p = np.tile(np.asarray(p['up_final_b'], np.float32), ph)[None, :]
    wi = _block_diag(np.asarray(p['nm_init_w'], np.float32)[:, :, 0].T, ph)
    bi = np.tile(np.asarray(p['nm_init_b'], np.float32), ph)[None, :]
    add('mid_w', w3p @ wi)
    add('mid_b', b3p @ wi + bi)

    # --- NoiseModel ConvTranspose stack
    for li, (w, b) in enumerate(p['nm_ct']):
        arrw = _phase_convt_weight(w, ph)
        arrb = np.tile(np.asarray(b, np.float32), 2 * ph)[None, :]
        if arrw.shape[1] > SLAB_W:
            add_wide(f'nm{li}_w', arrw)
            add_wide(f'nm{li}_b', arrb)
        else:
            add(f'nm{li}_w', arrw)
            add(f'nm{li}_b', arrb)
        ph *= 2
    assert ph == P_FINAL

    # --- epilogue constants (mask_after=1 -> only the DC rfft bin survives):
    #     cols [0:P)  : pruned nm_final 1x1 conv, block-diag over the P phases
    #     cols [P:2P) : per-frame mean of the noise (ortho rfft->irfft DC factor 1/SPF folded in)
    wf = np.asarray(p['nm_final_w'], np.float32)[:MASK_AFTER, :, 0].T            # (DIM, 1)
    epi = np.zeros((P_FINAL * DIM, 2 * P_FINAL), np.float32)
    epi[:, :P_FINAL] = _block_diag(wf, P_FINAL)
    epi[:, P_FINAL:] = _block_diag(np.full((SPF, 1), 1.0 / SPF, np.float32), P_FINAL)
    add('epi_w', epi)
    add('epi_b', np.full((1, P_FINAL), float(np.asarray(p['nm_final_b'])[0]), np.float32))
    # irfft of a DC-only spectrum == broadcast the per-frame value across its SPF samples.
    add_wide('expand', _block_diag(np.ones((1, SPF), np.float32), P_FINAL))      # (P, P*SPF)

    slab = jnp.asarray(np.concatenate(blocks, axis=0))
    return slab, layout


# ------------------------------ fused kernel ----------------------------------
def _make_kernel(layout, n_up_ct, n_nm_ct):
    def kernel(slab_ref, noise_ref, o_ref):
        def load(name):                       # static sub-view of the packed slab
            if name in layout:
                r0, r, c = layout[name]
                return slab_ref[r0:r0 + r, :c]
            lo = layout[name + '_lo']
            hi = layout[name + '_hi']
            return jnp.concatenate(
                [slab_ref[lo[0]:lo[0] + lo[1], :lo[2]],
                 slab_ref[hi[0]:hi[0] + hi[1], :hi[2]]], axis=1)

        def mm(x, w):
            return jnp.dot(x, w, preferred_element_type=jnp.float32)

        def leaky(x):
            return jnp.where(x >= 0.0, x, LEAKY_SLOPE * x)

        def shift3(x):                        # im2col [x[m+1] | x[m] | x[m-1]], zero edge rows
            z = jnp.zeros((1, x.shape[1]), jnp.float32)
            xp = jnp.concatenate([x[1:, :], z], axis=0)
            xm = jnp.concatenate([z, x[:-1, :]], axis=0)
            return jnp.concatenate([xp, x, xm], axis=1)

        # ---- ConvUpsample: Linear, emitted directly frame-major (4, DIM) ----
        h = mm(load('lat4'), load('lin_w')) + load('lin_b')

        # ---- ConvTranspose1d(4,2,1) + LeakyReLU stack, phase-major ----
        for li in range(n_up_ct):
            h = leaky(mm(shift3(h), load(f'up{li}_w')) + load(f'up{li}_b'))

        # ---- Conv1d(3,1,1) fused with NoiseModel's 1x1 conv, then LeakyReLU ----
        h = leaky(mm(shift3(h), load('mid_w')) + load('mid_b'))

        # ---- NoiseModel ConvTranspose stack ----
        for li in range(n_nm_ct):
            h = leaky(mm(shift3(h), load(f'nm{li}_w')) + load(f'nm{li}_b'))
        # h: (START_SIZE, P_FINAL*DIM) phase-major == all N_NOISE_FRAMES frames

        # ---- band-limited noise (mask_after=1 -> DC bin only) ----
        epi = load('epi_w')                                           # (P*DIM, 2P)
        coeff = mm(h, epi[:, :P_FINAL]) + load('epi_b')               # pruned nm_final -> (4, P)
        re = mm(noise_ref[...], epi[:, P_FINAL:])                     # per-frame noise DC  -> (4, P)
        g = coeff * coeff * re                                        # squared=True, spectral scale
        # ortho irfft of DC-only spectrum == in-frame broadcast; output is already
        # lane-dense and in global sample order (row-major (4, 256) == 1024 samples).
        o_ref[...] = mm(g, load('expand')).astype(o_ref.dtype)
    return kernel


# ------------------------------- forward pass ---------------------------------
def make_forward(layout):
    kernel = _make_kernel(layout, N_UP_CT, N_NM_CT)
    vmem = pl.BlockSpec(memory_space=pltpu.MemorySpace.VMEM)
    call = pl.pallas_call(
        kernel,
        out_shape=jax.ShapeDtypeStruct((START_SIZE, N_SAMPLES // START_SIZE), jnp.float32),
        in_specs=[vmem, vmem],
    )

    def forward(slab, x, noise):
        del x                                   # the PyTorch module ignores its input
        noise_pm = noise.reshape(START_SIZE, (N_NOISE_FRAMES // START_SIZE) * SPF)
        return call(slab, noise_pm).reshape(1, 1, N_SAMPLES)

    return forward


# ---------------------- plain NumPy reference (PyTorch conventions) -----------
def _ref_forward(p, noise):
    f64 = np.float64

    def A(x):
        return np.asarray(x, f64)

    def leaky(x):
        return np.where(x >= 0, x, LEAKY_SLOPE * x)

    lat = A(p['latent'])[0]
    y = lat @ A(p['up_lin_w']).T + A(p['up_lin_b'])
    h = y.reshape(DIM, START_SIZE).T                       # (START_SIZE, DIM) frame-major

    def conv_t(h, w, b):                                   # ConvTranspose1d(4, stride 2, pad 1)
        w = A(w)
        L = h.shape[0]
        out = np.zeros((2 * L, w.shape[1]), f64)
        for m in range(L):
            for k in range(4):
                n = 2 * m + k - 1
                if 0 <= n < 2 * L:
                    out[n] += h[m] @ w[:, :, k]
        return out + A(b)

    def conv3(h, w, b):                                    # Conv1d(3, stride 1, pad 1)
        w = A(w)
        L = h.shape[0]
        out = np.zeros((L, w.shape[0]), f64)
        for m in range(L):
            for k in range(3):
                j = m + k - 1
                if 0 <= j < L:
                    out[m] += h[j] @ w[:, :, k].T
        return out + A(b)

    for w, b in p['up_ct']:
        h = leaky(conv_t(h, w, b))
    h = conv3(h, p['up_final_w'], p['up_final_b'])
    h = leaky(h @ A(p['nm_init_w'])[:, :, 0].T + A(p['nm_init_b']))
    for w, b in p['nm_ct']:
        h = leaky(conv_t(h, w, b))
    coeffs = h @ A(p['nm_final_w'])[:, :, 0].T + A(p['nm_final_b'])
    coeffs = coeffs ** 2
    coeffs[:, MASK_AFTER:] = 0.0                           # spectral mask
    spec = np.fft.rfft(A(noise), axis=-1, norm='ortho') * coeffs
    audio = np.fft.irfft(spec, n=SPF, axis=-1, norm='ortho')
    return audio.reshape(-1)


# ----------------------------------- main --------------------------------------
if __name__ == "__main__":
    key = jax.random.PRNGKey(0)
    pkey, xkey, nkey = jax.random.split(key, 3)
    params = make_params(pkey)
    slab, layout = prepare_params(params)       # one-time packing into a single slab

    x = jax.random.normal(xkey, (2, DIM), jnp.float32)              # ignored (as in PyTorch)
    noise = jax.random.uniform(nkey, (N_NOISE_FRAMES, SPF), jnp.float32, -1.0, 1.0)

    fwd = jax.jit(make_forward(layout))
    audio = jax.block_until_ready(fwd(slab, x, noise))
    assert audio.shape == (1, 1, N_SAMPLES), audio.shape
    a = np.asarray(audio).reshape(-1)
    assert bool(np.all(np.isfinite(a)))

    ref = _ref_forward(params, np.asarray(noise))
    rel_err = float(np.max(np.abs(a - ref)) / max(float(np.max(np.abs(ref))), 1e-12))
    assert rel_err < 5e-2, f"max relative error vs reference: {rel_err:.3e}"
    print("KERNEL_OK")
</pallas_src>

<mosaic_0001>
module attributes {stable_mosaic.version = 11 : i64} {
  func.func @kernel(%arg0: memref<1904x128xf32, #tpu.memory_space<vmem>>, %arg1: memref<4x256xf32, #tpu.memory_space<vmem>>, %arg2: memref<4x256xf32, #tpu.memory_space<vmem>>) attributes {dimension_semantics = [], scalar_prefetch = 0 : i64, scratch_operands = 0 : i64, tpu.core_type = #tpu.core_type<tc>} {
    %c0 = arith.constant 0 : index
    %c0_0 = arith.constant 0 : index
    %0 = vector.load %arg0[%c0, %c0_0] : memref<1904x128xf32, #tpu.memory_space<vmem>>, vector<4x128xf32>
    %c8 = arith.constant 8 : index
    %c0_1 = arith.constant 0 : index
    %1 = vector.load %arg0[%c8, %c0_1] : memref<1904x128xf32, #tpu.memory_space<vmem>>, vector<128x32xf32>
    %cst = arith.constant dense<0.000000e+00> : vector<4x32xf32>
    %2 = tpu.matmul %0, %1, %cst {dimension_numbers = #tpu.dot_dimension_numbers<[1], [0], [0], [1], [0, 0, 1, 1], [], []>} : vector<4x128xf32>, vector<128x32xf32>, vector<4x32xf32> -> vector<4x32xf32>
    %c136 = arith.constant 136 : index
    %c0_2 = arith.constant 0 : index
    %3 = vector.load %arg0[%c136, %c0_2] : memref<1904x128xf32, #tpu.memory_space<vmem>>, vector<4x32xf32>
    %4 = arith.addf %2, %3 : vector<4x32xf32>
    %cst_3 = arith.constant 0.000000e+00 : f32
    %5 = vector.broadcast %cst_3 : f32 to vector<1x32xf32>
    %6 = vector.extract_strided_slice %4 {offsets = [1, 0], sizes = [3, 32], strides = [1, 1]} : vector<4x32xf32> to vector<3x32xf32>
    %7 = tpu.concatenate %6, %5 in 0 : vector<3x32xf32>, vector<1x32xf32> -> vector<4x32xf32>
    %8 = vector.extract_strided_slice %4 {offsets = [0, 0], sizes = [3, 32], strides = [1, 1]} : vector<4x32xf32> to vector<3x32xf32>
    %9 = tpu.concatenate %5, %8 in 0 : vector<1x32xf32>, vector<3x32xf32> -> vector<4x32xf32>
    %10 = tpu.concatenate %7, %4, %9 in 1 : vector<4x32xf32>, vector<4x32xf32>, vector<4x32xf32> -> vector<4x96xf32>
    %c144 = arith.constant 144 : index
    %c0_4 = arith.constant 0 : index
    %11 = vector.load %arg0[%c144, %c0_4] : memref<1904x128xf32, #tpu.memory_space<vmem>>, vector<96x64xf32>
    %cst_5 = arith.constant dense<0.000000e+00> : vector<4x64xf32>
    %12 = tpu.matmul %10, %11, %cst_5 {dimension_numbers = #tpu.dot_dimension_numbers<[1], [0], [0], [1], [0, 0, 1, 1], [], []>} : vector<4x96xf32>, vector<96x64xf32>, vector<4x64xf32> -> vector<4x64xf32>
    %c240 = arith.constant 240 : index
    %c0_6 = arith.constant 0 : index
    %13 = vector.load %arg0[%c240, %c0_6] : memref<1904x128xf32, #tpu.memory_space<vmem>>, vector<1x64xf32>
    %14 = vector.broadcast %13 : vector<1x64xf32> to vector<4x64xf32>
    %15 = arith.addf %12, %14 : vector<4x64xf32>
    %cst_7 = arith.constant 0.000000e+00 : f32
    %16 = vector.broadcast %cst_7 : f32 to vector<4x64xf32>
    %17 = arith.cmpf oge, %15, %16 : vector<4x64xf32>
    %cst_8 = arith.constant 2.000000e-01 : f32
    %18 = vector.broadcast %cst_8 : f32 to vector<4x64xf32>
    %19 = arith.mulf %18, %15 : vector<4x64xf32>
    %20 = arith.select %17, %15, %19 : vector<4x64xi1>, vector<4x64xf32>
    %cst_9 = arith.constant 0.000000e+00 : f32
    %21 = vector.broadcast %cst_9 : f32 to vector<1x64xf32>
    %22 = vector.extract_strided_slice %20 {offsets = [1, 0], sizes = [3, 64], strides = [1, 1]} : vector<4x64xf32> to vector<3x64xf32>
    %23 = tpu.concatenate %22, %21 in 0 : vector<3x64xf32>, vector<1x64xf32> -> vector<4x64xf32>
    %24 = vector.extract_strided_slice %20 {offsets = [0, 0], sizes = [3, 64], strides = [1, 1]} : vector<4x64xf32> to vector<3x64xf32>
    %25 = tpu.concatenate %21, %24 in 0 : vector<1x64xf32>, vector<3x64xf32> -> vector<4x64xf32>
    %26 = tpu.concatenate %23, %20, %25 in 1 : vector<4x64xf32>, vector<4x64xf32>, vector<4x64xf32> -> vector<4x192xf32>
    %c248 = arith.constant 248 : index
    %c0_10 = arith.constant 0 : index
    %27 = vector.load %arg0[%c248, %c0_10] : memref<1904x128xf32, #tpu.memory_space<vmem>>, vector<192x128xf32>
    %cst_11 = arith.constant dense<0.000000e+00> : vector<4x128xf32>
    %28 = tpu.matmul %26, %27, %cst_11 {dimension_numbers = #tpu.dot_dimension_numbers<[1], [0], [0], [1], [0, 0, 1, 1], [], []>} : vector<4x192xf32>, vector<192x128xf32>, vector<4x128xf32> -> vector<4x128xf32>
    %c440 = arith.constant 440 : index
    %c0_12 = arith.constant 0 : index
    %29 = vector.load %arg0[%c440, %c0_12] : memref<1904x128xf32, #tpu.memory_space<vmem>>, vector<1x128xf32>
    %30 = vector.broadcast %29 : vector<1x128xf32> to vector<4x128xf32>
    %31 = arith.addf %28, %30 : vector<4x128xf32>
    %cst_13 = arith.constant 0.000000e+00 : f32
    %32 = vector.broadcast %cst_13 : f32 to vector<4x128xf32>
    %33 = arith.cmpf oge, %31, %32 : vector<4x128xf32>
    %cst_14 = arith.constant 2.000000e-01 : f32
    %34 = vector.broadcast %cst_14 : f32 to vector<4x128xf32>
    %35 = arith.mulf %34, %31 : vector<4x128xf32>
    %36 = arith.select %33, %31, %35 : vector<4x128xi1>, vector<4x128xf32>
    %cst_15 = arith.constant 0.000000e+00 : f32
    %37 = vector.broadcast %cst_15 : f32 to vector<1x128xf32>
    %38 = vector.extract_strided_slice %36 {offsets = [1, 0], sizes = [3, 128], strides = [1, 1]} : vector<4x128xf32> to vector<3x128xf32>
    %39 = tpu.concatenate %38, %37 in 0 : vector<3x128xf32>, vector<1x128xf32> -> vector<4x128xf32>
    %40 = vector.extract_strided_slice %36 {offsets = [0, 0], sizes = [3, 128], strides = [1, 1]} : vector<4x128xf32> to vector<3x128xf32>
    %41 = tpu.concatenate %37, %40 in 0 : vector<1x128xf32>, vector<3x128xf32> -> vector<4x128xf32>
    %42 = tpu.concatenate %39, %36, %41 in 1 : vector<4x128xf32>, vector<4x128xf32>, vector<4x128xf32> -> vector<4x384xf32>
    %c448 = arith.constant 448 : index
    %c0_16 = arith.constant 0 : index
    %43 = vector.load %arg0[%c448, %c0_16] : memref<1904x128xf32, #tpu.memory_space<vmem>>, vector<384x128xf32>
    %cst_17 = arith.constant dense<0.000000e+00> : vector<4x128xf32>
    %44 = tpu.matmul %42, %43, %cst_17 {dimension_numbers = #tpu.dot_dimension_numbers<[1], [0], [0], [1], [0, 0, 1, 1], [], []>} : vector<4x384xf32>, vector<384x128xf32>, vector<4x128xf32> -> vector<4x128xf32>
    %c832 = arith.constant 832 : index
    %c0_18 = arith.constant 0 : index
    %45 = vector.load %arg0[%c832, %c0_18] : memref<1904x128xf32, #tpu.memory_space<vmem>>, vector<1x128xf32>
    %46 = vector.broadcast %45 : vector<1x128xf32> to vector<4x128xf32>
    %47 = arith.addf %44, %46 : vector<4x128xf32>
    %cst_19 = arith.constant 0.000000e+00 : f32
    %48 = vector.broadcast %cst_19 : f32 to vector<4x128xf32>
    %49 = arith.cmpf oge, %47, %48 : vector<4x128xf32>
    %cst_20 = arith.constant 2.000000e-01 : f32
    %50 = vector.broadcast %cst_20 : f32 to vector<4x128xf32>
    %51 = arith.mulf %50, %47 : vector<4x128xf32>
    %52 = arith.select %49, %47, %51 : vector<4x128xi1>, vector<4x128xf32>
    %cst_21 = arith.constant 0.000000e+00 : f32
    %53 = vector.broadcast %cst_21 : f32 to vector<1x128xf32>
    %54 = vector.extract_strided_slice %52 {offsets = [1, 0], sizes = [3, 128], strides = [1, 1]} : vector<4x128xf32> to vector<3x128xf32>
    %55 = tpu.concatenate %54, %53 in 0 : vector<3x128xf32>, vector<1x128xf32> -> vector<4x128xf32>
    %56 = vector.extract_strided_slice %52 {offsets = [0, 0], sizes = [3, 128], strides = [1, 1]} : vector<4x128xf32> to vector<3x128xf32>
    %57 = tpu.concatenate %53, %56 in 0 : vector<1x128xf32>, vector<3x128xf32> -> vector<4x128xf32>
    %58 = tpu.concatenate %55, %52, %57 in 1 : vector<4x128xf32>, vector<4x128xf32>, vector<4x128xf32> -> vector<4x384xf32>
    %c840 = arith.constant 840 : index
    %c0_22 = arith.constant 0 : index
    %59 = vector.load %arg0[%c840, %c0_22] : memref<1904x128xf32, #tpu.memory_space<vmem>>, vector<384x128xf32>
    %c1224 = arith.constant 1224 : index
    %c0_23 = arith.constant 0 : index
    %60 = vector.load %arg0[%c1224, %c0_23] : memref<1904x128xf32, #tpu.memory_space<vmem>>, vector<384x128xf32>
    %61 = tpu.concatenate %59, %60 in 1 : vector<384x128xf32>, vector<384x128xf32> -> vector<384x256xf32>
    %cst_24 = arith.constant dense<0.000000e+00> : vector<4x256xf32>
    %62 = tpu.matmul %58, %61, %cst_24 {dimension_numbers = #tpu.dot_dimension_numbers<[1], [0], [0], [1], [0, 0, 1, 1], [], []>} : vector<4x384xf32>, vector<384x256xf32>, vector<4x256xf32> -> vector<4x256xf32>
    %c1608 = arith.constant 1608 : index
    %c0_25 = arith.constant 0 : index
    %63 = vector.load %arg0[%c1608, %c0_25] : memref<1904x128xf32, #tpu.memory_space<vmem>>, vector<1x128xf32>
    %c1616 = arith.constant 1616 : index
    %c0_26 = arith.constant 0 : index
    %64 = vector.load %arg0[%c1616, %c0_26] : memref<1904x128xf32, #tpu.memory_space<vmem>>, vector<1x128xf32>
    %65 = tpu.concatenate %63, %64 in 1 : vector<1x128xf32>, vector<1x128xf32> -> vector<1x256xf32>
    %66 = vector.broadcast %65 : vector<1x256xf32> to vector<4x256xf32>
    %67 = arith.addf %62, %66 : vector<4x256xf32>
    %cst_27 = arith.constant 0.000000e+00 : f32
    %68 = vector.broadcast %cst_27 : f32 to vector<4x256xf32>
    %69 = arith.cmpf oge, %67, %68 : vector<4x256xf32>
    %cst_28 = arith.constant 2.000000e-01 : f32
    %70 = vector.broadcast %cst_28 : f32 to vector<4x256xf32>
    %71 = arith.mulf %70, %67 : vector<4x256xf32>
    %72 = arith.select %69, %67, %71 : vector<4x256xi1>, vector<4x256xf32>
    %c1624 = arith.constant 1624 : index
    %c0_29 = arith.constant 0 : index
    %73 = vector.load %arg0[%c1624, %c0_29] : memref<1904x128xf32, #tpu.memory_space<vmem>>, vector<256x16xf32>
    %74 = vector.extract_strided_slice %73 {offsets = [0, 0], sizes = [256, 8], strides = [1, 1]} : vector<256x16xf32> to vector<256x8xf32>
    %cst_30 = arith.constant dense<0.000000e+00> : vector<4x8xf32>
    %75 = tpu.matmul %72, %74, %cst_30 {dimension_numbers = #tpu.dot_dimension_numbers<[1], [0], [0], [1], [0, 0, 1, 1], [], []>} : vector<4x256xf32>, vector<256x8xf32>, vector<4x8xf32> -> vector<4x8xf32>
    %c1880 = arith.constant 1880 : index
    %c0_31 = arith.constant 0 : index
    %76 = vector.load %arg0[%c1880, %c0_31] : memref<1904x128xf32, #tpu.memory_space<vmem>>, vector<1x8xf32>
    %77 = vector.broadcast %76 : vector<1x8xf32> to vector<4x8xf32>
    %78 = arith.addf %75, %77 : vector<4x8xf32>
    %c0_32 = arith.constant 0 : index
    %c0_33 = arith.constant 0 : index
    %79 = vector.load %arg1[%c0_32, %c0_33] : memref<4x256xf32, #tpu.memory_space<vmem>>, vector<4x256xf32>
    %80 = vector.extract_strided_slice %73 {offsets = [0, 8], sizes = [256, 8], strides = [1, 1]} : vector<256x16xf32> to vector<256x8xf32>
    %cst_34 = arith.constant dense<0.000000e+00> : vector<4x8xf32>
    %81 = tpu.matmul %79, %80, %cst_34 {dimension_numbers = #tpu.dot_dimension_numbers<[1], [0], [0], [1], [0, 0, 1, 1], [], []>} : vector<4x256xf32>, vector<256x8xf32>, vector<4x8xf32> -> vector<4x8xf32>
    %82 = arith.mulf %78, %78 : vector<4x8xf32>
    %83 = arith.mulf %82, %81 : vector<4x8xf32>
    %c1888 = arith.constant 1888 : index
    %c0_35 = arith.constant 0 : index
    %84 = vector.load %arg0[%c1888, %c0_35] : memref<1904x128xf32, #tpu.memory_space<vmem>>, vector<8x128xf32>
    %c1896 = arith.constant 1896 : index
    %c0_36 = arith.constant 0 : index
    %85 = vector.load %arg0[%c1896, %c0_36] : memref<1904x128xf32, #tpu.memory_space<vmem>>, vector<8x128xf32>
    %86 = tpu.concatenate %84, %85 in 1 : vector<8x128xf32>, vector<8x128xf32> -> vector<8x256xf32>
    %cst_37 = arith.constant dense<0.000000e+00> : vector<4x256xf32>
    %87 = tpu.matmul %83, %86, %cst_37 {dimension_numbers = #tpu.dot_dimension_numbers<[1], [0], [0], [1], [0, 0, 1, 1], [], []>} : vector<4x8xf32>, vector<8x256xf32>, vector<4x256xf32> -> vector<4x256xf32>
    %c0_38 = arith.constant 0 : index
    %c0_39 = arith.constant 0 : index
    %88 = vector.load %arg2[%c0_38, %c0_39] : memref<4x256xf32, #tpu.memory_space<vmem>>, vector<4x256xf32>
    tpu.vector_store %arg2[%c0_38, %c0_39], %87 {strides = array<i32>} : memref<4x256xf32, #tpu.memory_space<vmem>>, vector<4x256xf32>,
    return
  }
}

</mosaic_0001>

<bundles_post_ra>
// kernel: forward.1
= control target key start
LH: loop header
LB: loop body
LE: loop exit
PB: predicated region body
PF: predicated region fallthrough
CT: control target
= control target key end

     0   :  { %7 = vsyncpa [#allocation3], 0  ;;  %s1881_s9 = smov [#allocation2]   ;;  %s2030_s0 = inlined_call_operand.hbm [shape: f32[1904,128], index: 0, kind: input, shape index: {}]   ;;  %s2031_s1 = inlined_call_operand.vmem [shape: f32[4,256], index: 1, kind: input, shape index: {}]   ;;  %s2032_s2 = inlined_call_operand.vmem [shape: f32[4,256], index: 2, kind: output, shape index: {}]  }
   0x1   :  { %s13_s10 = sshll.u32 %s1881_s9, 4  ;;  %s1857_s13 = scalar_lea.hbm %s2030_s0, 30464  ;;  %s14_s10 = int_to_ptr.vmem [resolvable:$true] %s13_s10 }
   0x2   :  { %p1858_p0 = scmp.ne.s32.totalorder %s2030_s0, %s1857_s13  ;;  %p1861_p1 = scmp.lt.u32.totalorder %s1857_s13, %s2030_s0 }
   0x4   :  { %p1863_p2 = pnand %p1861_p1, %p1858_p0 }
   0x6   :  { %1866 = shalt.err (!%p1863_p2)
}
   0x7   :  { %s1867_s18 = scalar_lea.vmem %s14_s10, 30464  ;;  %p1872_p4 = scmp.lt.s32.totalorder %s14_s10, %s14_s10 }
   0x8   :  { %p1868_p3 = scmp.ne.s32.totalorder %s14_s10, %s1867_s18  ;;  %p1873_p5 = scmp.lt.s32.totalorder %s1867_s18, %s1867_s18 }
   0xa   :  { %p1874_p6 = por %p1873_p5, %p1872_p4 }
   0xc   :  { %p1875_p7 = pnand %p1874_p6, %p1868_p3 }
   0xe   :  { %1878 = shalt.err (!%p1875_p7)
}
   0xf   :  { %s1882_s19 = smov 128   ;;  %s1883_s20 = smov 8  }
  0x10   :  { %19 = dma.hbm_to_vmem [thread:$0]  %s2030_s0, 30464, %s14_s10, [#allocation3], %s1882_s19, %s1882_s19, %s1883_s20  }
  0x11   :  { %1879 = dma.done.wait [#allocation3], 30464  }
  0x12   :  { %1880 = vsyncadd [#allocation3], 4294936832  ;;  %v1884_v0 = vmov 0.0|0.0   ;;  %vm1885_vm0 = vmmov 0   ;;  %v1886_v1 = vmov 0.0   ;;  %v26_v2 = vld [vmem:[#allocation2 + $0x8] sm:$0xff] }
  0x13   :  { %1469 = vmatprep.subr.bf16.mxu0 %v1884_v0  ;;  %1404 = vmatprep.mubr.msk.f32.mxu0 %vm1885_vm0, %v1886_v1  ;;  %v27_v3 = vld [vmem:[#allocation2 + $0x10] sm:$0xff]  ;;  %v28_v4 = vld [vmem:[#allocation2 + $0x18] sm:$0xff]  ;;  %v29_v6 = vld [vmem:[#allocation2 + $0x20] sm:$0xff]  ;;  %vm120_vm1 = vcmask 1040384   ;;  %s1887_s0 = smov 32   ;;  %s1888_s23 = smov 64  }
  0x14   :  { %1493 = vmatprep.subr.bf16.mxu1 %v1884_v0  ;;  %1431 = vmatprep.mubr.msk.f32.mxu1 %vm1885_vm0, %v1886_v1  ;;  %v1470_v5 = vpack.c.bf16 %v27_v3, %v26_v2  ;;  %v1473_v7 = vpack.c.bf16 %v29_v6, %v28_v4  ;;  %v30_v8 = vld [vmem:[#allocation2 + $0x28] sm:$0xff]  ;;  %v31_v9 = vld [vmem:[#allocation2 + $0x30] sm:$0xff]  ;;  %v32_v11 = vld [vmem:[#allocation2 + $0x38] sm:$0xff]  ;;  %vm116_vm2 = vcmask 1042432   ;;  %vm129_vm3 = vcmask 261120   ;;  %s1889_s24 = smov 120  }
  0x15   :  { %v1476_v10 = vpack.c.bf16 %v31_v9, %v30_v8  ;;  %v33_v12 = vld [vmem:[#allocation2 + $0x40] sm:$0xff]  ;;  %v34_v14 = vld [vmem:[#allocation2 + $0x48] sm:$0xff]  ;;  %v35_v15 = vld [vmem:[#allocation2 + $0x50] sm:$0xff]  ;;  %vm131_vm4 = vcmask 523264   ;;  %vm150_vm5 = vcmask 785408   ;;  %vm1120_vm12 = vcmask 64512  }
  0x16   :  { %1471 = vmatpush3.bf16.msra.mxu0 %v1470_v5  ;;  %v1479_v13 = vpack.c.bf16 %v33_v12, %v32_v11  ;;  %v1482_v16 = vpack.c.bf16 %v35_v15, %v34_v14  ;;  %v36_v17 = vld [vmem:[#allocation2 + $0x58] sm:$0xff]  ;;  %v37_v18 = vld [vmem:[#allocation2 + $0x60] sm:$0xff]  ;;  %v38_v20 = vld [vmem:[#allocation2 + $0x68] sm:$0xff] }
  0x17   :  { %1472 = vmatprep.subr.bf16.mxu0 %v1884_v0  ;;  %v1485_v19 = vpack.c.bf16 %v37_v18, %v36_v17  ;;  %v39_v21 = vld [vmem:[#allocation2 + $0x70] sm:$0xff]  ;;  %v40_v23 = vld [vmem:[#allocation2 + $0x78] sm:$0xff]  ;;  %v41_v24 = vld [vmem:[#allocation2 + $0x80] sm:$0xff] }
  0x18   :  { %v1488_v22 = vpack.c.bf16 %v39_v21, %v38_v20  ;;  %v1491_v25 = vpack.c.bf16 %v41_v24, %v40_v23  ;;  %v25_v26 = vld [vmem:[#allocation2] sm:$0xf]  ;;  %v133_v27 = vld [vmem:[#allocation2 + $0x90] sm:$0xff]  ;;  %v134_v28 = vld [vmem:[#allocation2 + $0x98] sm:$0xff] }
  0x19   :  { %v135_v29 = vld [vmem:[#allocation2 + $0xa0] sm:$0xff]  ;;  %v1494_v30 = vpack.c.bf16 %v134_v28, %v133_v27  ;;  %v136_v31 = vld [vmem:[#allocation2 + $0xa8] sm:$0xff]  ;;  %v137_v33 = vld [vmem:[#allocation2 + $0xb0] sm:$0xff] }
  0x1a   :  { %1474 = vmatpush3.bf16.msra.mxu0 %v1473_v7  ;;  %v1497_v32 = vpack.c.bf16 %v136_v31, %v135_v29  ;;  %v138_v34 = vld [vmem:[#allocation2 + $0xb8] sm:$0xff]  ;;  %v139_v36 = vld [vmem:[#allocation2 + $0xc0] sm:$0xff]  ;;  %v140_v37 = vld [vmem:[#allocation2 + $0xc8] sm:$0xff] }
  0x1b   :  { %1475 = vmatprep.subr.bf16.mxu0 %v1884_v0  ;;  %1495 = vmatpush3.bf16.msra.mxu1 %v1494_v30  ;;  %v1500_v35 = vpack.c.bf16 %v138_v34, %v137_v33  ;;  %v1503_v38 = vpack.c.bf16 %v140_v37, %v139_v36  ;;  %v141_v39 = vld [vmem:[#allocation2 + $0xd0] sm:$0xff]  ;;  %v142_v40 = vld [vmem:[#allocation2 + $0xd8] sm:$0xff]  ;;  %v143_v42 = vld [vmem:[#allocation2 + $0xe0] sm:$0xff] }
  0x1c   :  { %1496 = vmatprep.subr.bf16.mxu1 %v1884_v0  ;;  %v1506_v41 = vpack.c.bf16 %v142_v40, %v141_v39  ;;  %v144_v43 = vld [vmem:[#allocation2 + $0xe8] sm:$0xff]  ;;  %v238_v57 = vld [vmem:[#allocation2 + $0xf8] sm:$0xff]  ;;  %v239_v58 = vld [vmem:[#allocation2 + $0x100] sm:$0xff] }
  0x1d   :  { %v1509_v44 = vpack.c.bf16 %v144_v43, %v143_v42  ;;  %v42_v45 = vld [vmem:[#allocation2 + $0x88] sm:$0xf]  ;;  %v1512_v60 = vpack.c.bf16 %v239_v58, %v238_v57  ;;  %v241_v61 = vld [vmem:[#allocation2 + $0x110] sm:$0xff]  ;;  %v242_v63 = vld [vmem:[#allocation2 + $0x118] sm:$0xff] }
  0x1e   :  { %1477 = vmatpush3.bf16.msra.mxu0 %v1476_v10  ;;  %v240_v59 = vld [vmem:[#allocation2 + $0x108] sm:$0xff]  ;;  %v243_v2 = vld [vmem:[#allocation2 + $0x120] sm:$0xff]  ;;  %v245_v5 = vld [vmem:[#allocation2 + $0x130] sm:$0xff] }
  0x1f   :  { %1478 = vmatprep.subr.bf16.mxu0 %v1884_v0  ;;  %1498 = vmatpush3.bf16.msra.mxu1 %v1497_v32  ;;  %v1515_v62 = vpack.c.bf16 %v241_v61, %v240_v59  ;;  %v1518_v3 = vpack.c.bf16 %v243_v2, %v242_v63  ;;  %v244_v4 = vld [vmem:[#allocation2 + $0x128] sm:$0xff]  ;;  %v246_v7 = vld [vmem:[#allocation2 + $0x138] sm:$0xff]  ;;  %v247_v8 = vld [vmem:[#allocation2 + $0x140] sm:$0xff] }
  0x20   :  { %1499 = vmatprep.subr.bf16.mxu1 %v1884_v0  ;;  %v1521_v6 = vpack.c.bf16 %v245_v5, %v244_v4  ;;  %v1524_v9 = vpack.c.bf16 %v247_v8, %v246_v7  ;;  %v248_v10 = vld [vmem:[#allocation2 + $0x148] sm:$0xff]  ;;  %v249_v11 = vld [vmem:[#allocation2 + $0x150] sm:$0xff]  ;;  %v251_v14 = vld [vmem:[#allocation2 + $0x160] sm:$0xff] }
  0x21   :  { %v1527_v12 = vpack.c.bf16 %v249_v11, %v248_v10  ;;  %v253_v17 = vld [vmem:[#allocation2 + $0x170] sm:$0xff]  ;;  %v255_v20 = vld [vmem:[#allocation2 + $0x180] sm:$0xff]  ;;  %v260_v28 = vld [vmem:[#allocation2 + $0x1a8] sm:$0xff] }
  0x22   :  { %1480 = vmatpush3.bf16.msra.mxu0 %v1479_v13  ;;  %v250_v13 = vld [vmem:[#allocation2 + $0x158] sm:$0xff]  ;;  %v257_v23 = vld [vmem:[#allocation2 + $0x190] sm:$0xff]  ;;  %v366_v31 = vld [vmem:[#allocation2 + $0x240] sm:$0xff] }
  0x23   :  { %1481 = vmatprep.subr.bf16.mxu0 %v1884_v0  ;;  %1501 = vmatpush3.bf16.msra.mxu1 %v1500_v35  ;;  %v1530_v15 = vpack.c.bf16 %v251_v14, %v250_v13  ;;  %v261_v29 = vld [vmem:[#allocation2 + $0x1b0] sm:$0xff]  ;;  %v367_v32 = vld [vmem:[#allocation2 + $0x248] sm:$0xff]  ;;  %v350_v33 = vld [vmem:[#allocation2 + $0x1c0] sm:$0xff] }
  0x24   :  { %1502 = vmatprep.subr.bf16.mxu1 %v1884_v0  ;;  %v1545_v30 = vpack.c.bf16 %v261_v29, %v260_v28  ;;  %v1547_v34 = vpack.c.bf16 %v367_v32, %v366_v31  ;;  %v351_v35 = vld [vmem:[#allocation2 + $0x1c8] sm:$0xff]  ;;  %v368_v36 = vld [vmem:[#allocation2 + $0x250] sm:$0xff]  ;;  %v369_v37 = vld [vmem:[#allocation2 + $0x258] sm:$0xff] }
  0x25   :  { %v1551_v39 = vpack.c.bf16 %v369_v37, %v368_v36  ;;  %v352_v40 = vld [vmem:[#allocation2 + $0x1d0] sm:$0xff]  ;;  %v370_v42 = vld [vmem:[#allocation2 + $0x260] sm:$0xff]  ;;  %v371_v43 = vld [vmem:[#allocation2 + $0x268] sm:$0xff] }
  0x26   :  { %1483 = vmatpush3.bf16.msra.mxu0 %v1482_v16  ;;  %v252_v16 = vld [vmem:[#allocation2 + $0x168] sm:$0xff]  ;;  %v356_v57 = vld [vmem:[#allocation2 + $0x1f0] sm:$0xff]  ;;  %v357_v58 = vld [vmem:[#allocation2 + $0x1f8] sm:$0xff] }
  0x27   :  { %1484 = vmatprep.subr.bf16.mxu0 %v1884_v0  ;;  %1504 = vmatpush3.bf16.msra.mxu1 %v1503_v38  ;;  %v1533_v18 = vpack.c.bf16 %v253_v17, %v252_v16  ;;  %v1549_v38 = vpack.c.bf16 %v351_v35, %v350_v33  ;;  %v374_v59 = vld [vmem:[#allocation2 + $0x280] sm:$0xff]  ;;  %v1561_v63 = vpack.c.bf16 %v357_v58, %v356_v57  ;;  %v359_v4 = vld [vmem:[#allocation2 + $0x208] sm:$0xff]  ;;  %v377_v7 = vld [vmem:[#allocation2 + $0x298] sm:$0xff] }
  0x28   :  { %1505 = vmatprep.subr.bf16.mxu1 %v1884_v0  ;;  %v360_v10 = vld [vmem:[#allocation2 + $0x210] sm:$0xff]  ;;  %v361_v11 = vld [vmem:[#allocation2 + $0x218] sm:$0xff]  ;;  %v379_v13 = vld [vmem:[#allocation2 + $0x2a8] sm:$0xff] }
  0x29   :  { %v1569_v14 = vpack.c.bf16 %v361_v11, %v360_v10  ;;  %v601_v29 = vld [vmem:[#allocation2 + $0x4c8] sm:$0xff]  ;;  %v554_v33 = vld [vmem:[#allocation2 + $0x350] sm:$0xff]  ;;  %v604_v35 = vld [vmem:[#allocation2 + $0x4e0] sm:$0xff] }
  0x2a   :  { %1486 = vmatpush3.bf16.msra.mxu0 %v1485_v19  ;;  %v254_v19 = vld [vmem:[#allocation2 + $0x178] sm:$0xff]  ;;  %v553_v31 = vld [vmem:[#allocation2 + $0x348] sm:$0xff]  ;;  %v562_v57 = vld [vmem:[#allocation2 + $0x390] sm:$0xff] }
  0x2b   :  { %1487 = vmatprep.subr.bf16.mxu0 %v1884_v0  ;;  %1507 = vmatpush3.bf16.msra.mxu1 %v1506_v41  ;;  %v1536_v21 = vpack.c.bf16 %v255_v20, %v254_v19  ;;  %v353_v41 = vld [vmem:[#allocation2 + $0x1d8] sm:$0xff]  ;;  %v362_v20 = vld [vmem:[#allocation2 + $0x220] sm:$0xff]  ;;  %v1605_v36 = vpack.c.bf16 %v554_v33, %v553_v31  ;;  %v392_v31 = vld [vmem:[#allocation2 + $0x310] sm:$0xff] }
  0x2c   :  { %1508 = vmatprep.subr.bf16.mxu1 %v1884_v0  ;;  %v611_v58 = vld [vmem:[#allocation2 + $0x518] sm:$0xff]  ;;  %vm1968_vm8 = vmneg %vm120_vm1 }
  0x2e   :  { %1489 = vmatpush3.bf16.msra.mxu0 %v1488_v22  ;;  %v256_v22 = vld [vmem:[#allocation2 + $0x188] sm:$0xff] }
  0x2f   :  { %1490 = vmatprep.subr.bf16.mxu0 %v1884_v0  ;;  %1510 = vmatpush3.bf16.msra.mxu1 %v1509_v44  ;;  %v1539_v24 = vpack.c.bf16 %v257_v23, %v256_v22  ;;  %v1205_v44 = vld [vmem:[#allocation2 + $0xf0] ss:$0 sm:$0xff] }
  0x30   :  { %1511 = vmatprep.subr.bf16.mxu1 %v1884_v0  ;;  %v380_v23 = vld [vmem:[#allocation2 + $0x2b0] sm:$0xff] }
  0x32   :  { %1492 = vmatpush3.bf16.msra.mxu0 %v1491_v25  ;;  %v258_v25 = vld [vmem:[#allocation2 + $0x198] sm:$0xff] }
  0x33   :  { %1548 = vmatprep.subr.bf16.mxu0 %v1547_v34  ;;  %v603_v34 = vld [vmem:[#allocation2 + $0x4d8] sm:$0xff] }
  0x34   :  { %v1607_v37 = vpack.c.bf16 %v604_v35, %v603_v34  ;;  %v394_v34 = vld [vmem:[#allocation2 + $0x320] sm:$0xff]  ;;  %v395_v35 = vld [vmem:[#allocation2 + $0x328] sm:$0xff] }
  0x35   :  { %1405 = vmatmul.mubr.f32.vlgmr.msra.gmra.mrb[0].mxu0 %v25_v26  ;;  %v259_v26 = vld [vmem:[#allocation2 + $0x1a0] sm:$0xff] }
  0x36   :  { %v1542_v27 = vpack.c.bf16 %v259_v26, %v258_v25  ;;  %1550 = vmatpush3.bf16.msra.mxu0 %v1549_v38  ;;  %v364_v26 = vld [vmem:[#allocation2 + $0x230] sm:$0xff]  ;;  %v555_v38 = vld [vmem:[#allocation2 + $0x358] sm:$0xff] }
  0x37   :  { %1552 = vmatprep.subr.bf16.mxu0 %v1551_v39  ;;  %v556_v39 = vld [vmem:[#allocation2 + $0x360] sm:$0xff] }
 0x108   :  { %v109_v46 = vpop.f32.mrb[0].mxu0 }
 0x109   :  { %v110_v47 = vadd.f32 %v109_v46, %v42_v45  ;;  %v1406_v48 = vpop.f32.mrb[1].mxu0  ;;  %v1553_v45 = vpack.c.bf16 %v353_v41, %v352_v40  ;;  %v1555_v46 = vpack.c.bf16 %v371_v43, %v370_v42  ;;  %v605_v40 = vld [vmem:[#allocation2 + $0x4e8] sm:$0xff]  ;;  %v606_v41 = vld [vmem:[#allocation2 + $0x4f0] sm:$0xff]  ;;  %v1609_v42 = vpack.c.bf16 %v556_v39, %v555_v38  ;;  %v397_v38 = vld [vmem:[#allocation2 + $0x338] sm:$0xff] }
 0x10a   :  { %v355_v48 = vld [vmem:[#allocation2 + $0x1e8] sm:$0xff]  ;;  %v1611_v43 = vpack.c.bf16 %v606_v41, %v605_v40 }
 0x10b   :  { %122 = vrot.lane.b32.xlu0 %v110_v47, %s1887_s0  ;;  %v118_v49 = vrot.slane %v110_v47, 7  ;;  %v114_v51 = vrot.slane %v110_v47, 1  ;;  %v354_v47 = vld [vmem:[#allocation2 + $0x1e0] sm:$0xff]  ;;  %1554 = vmatpush3.bf16.msra.mxu0 %v1553_v45  ;;  %v558_v45 = vld [vmem:[#allocation2 + $0x370] sm:$0xff]  ;;  %v1213_v40 = vld [vmem:[#allocation2 + $0x648] ss:$0 sm:$0xff] }
 0x10c   :  { %1556 = vmatprep.subr.bf16.mxu0 %v1555_v46  ;;  %v607_v46 = vld [vmem:[#allocation2 + $0x4f8] sm:$0xff] }
 0x10d   :  { %v121_v50 = vsel %vm120_vm1, 0.0, %v118_v49  ;;  %v117_v53 = vsel %vm116_vm2, %v114_v51, 0.0  ;;  %v373_v51 = vld [vmem:[#allocation2 + $0x278] sm:$0xff] }
 0x10f   :  { %126 = vrot.lane.b32.xlu0 %v121_v50, %s1888_s23  ;;  %v372_v50 = vld [vmem:[#allocation2 + $0x270] sm:$0xff] }
 0x17d   :  { %v123_v52 = vpop.permute.xlu0 %122 }
 0x17e   :  { %v130_v54 = vsel %vm129_vm3, %v117_v53, %v123_v52 }
 0x181   :  { %v127_v55 = vpop.permute.xlu0 %126 }
 0x182   :  { %v132_v56 = vsel %vm131_vm4, %v130_v54, %v127_v55  ;;  %v1557_v54 = vpack.c.bf16 %v355_v48, %v354_v47  ;;  %v608_v47 = vld [vmem:[#allocation2 + $0x500] sm:$0xff] }
 0x183   :  { %1432 = vmatmul.mubr.msk.f32.vlgmr.msra.gmra.mrb[0].mxu1 %vm150_vm5, %v132_v56  ;;  %v1559_v56 = vpack.c.bf16 %v373_v51, %v372_v50  ;;  %v559_v50 = vld [vmem:[#allocation2 + $0x378] sm:$0xff]  ;;  %v560_v51 = vld [vmem:[#allocation2 + $0x380] sm:$0xff] }
 0x184   :  { %1513 = vmatpush1.bf16.msra.mxu1 %v1512_v60  ;;  %v375_v60 = vld [vmem:[#allocation2 + $0x288] sm:$0xff]  ;;  %1558 = vmatpush3.bf16.msra.mxu0 %v1557_v54  ;;  %v1617_v54 = vpack.c.bf16 %v560_v51, %v559_v50  ;;  %v570_v51 = vld [vmem:[#allocation2 + $0x3d0] sm:$0xff] }
 0x185   :  { %1514 = vmatprep.subr.bf16.mxu1 %v1884_v0  ;;  %1560 = vmatprep.subr.bf16.mxu0 %v1559_v56  ;;  %v1563_v2 = vpack.c.bf16 %v375_v60, %v374_v59  ;;  %v561_v56 = vld [vmem:[#allocation2 + $0x388] sm:$0xff]  ;;  %v612_v59 = vld [vmem:[#allocation2 + $0x520] sm:$0xff] }
 0x186   :  { %v1621_v60 = vpack.c.bf16 %v562_v57, %v561_v56  ;;  %v569_v50 = vld [vmem:[#allocation2 + $0x3c8] sm:$0xff]  ;;  %v571_v56 = vld [vmem:[#allocation2 + $0x3d8] sm:$0xff]  ;;  %v572_v57 = vld [vmem:[#allocation2 + $0x3e0] sm:$0xff] }
 0x188   :  { %1516 = vmatpush1.bf16.msra.mxu1 %v1515_v62  ;;  %1562 = vmatpush3.bf16.msra.mxu0 %v1561_v63  ;;  %v564_v63 = vld [vmem:[#allocation2 + $0x3a0] sm:$0xff] }
 0x189   :  { %1517 = vmatprep.subr.bf16.mxu1 %v1884_v0  ;;  %1564 = vmatprep.subr.bf16.mxu0 %v1563_v2  ;;  %v613_v2 = vld [vmem:[#allocation2 + $0x528] sm:$0xff] }
 0x18c   :  { %1519 = vmatpush1.bf16.msra.mxu1 %v1518_v3  ;;  %v358_v3 = vld [vmem:[#allocation2 + $0x200] sm:$0xff] }
 0x18d   :  { %1520 = vmatprep.subr.bf16.mxu1 %v1884_v0  ;;  %v1565_v8 = vpack.c.bf16 %v359_v4, %v358_v3  ;;  %v614_v3 = vld [vmem:[#allocation2 + $0x530] sm:$0xff] }
 0x18f   :  { %1566 = vmatpush3.bf16.msra.mxu0 %v1565_v8 }
 0x190   :  { %1522 = vmatpush1.bf16.msra.mxu1 %v1521_v6  ;;  %v376_v6 = vld [vmem:[#allocation2 + $0x290] sm:$0xff] }
 0x191   :  { %1523 = vmatprep.subr.bf16.mxu1 %v1884_v0 }
 0x194   :  { %1525 = vmatpush1.bf16.msra.mxu1 %v1524_v9  ;;  %v1567_v9 = vpack.c.bf16 %v377_v7, %v376_v6  ;;  %v565_v6 = vld [vmem:[#allocation2 + $0x3a8] sm:$0xff]  ;;  %v566_v7 = vld [vmem:[#allocation2 + $0x3b0] sm:$0xff] }
 0x195   :  { %1526 = vmatprep.subr.bf16.mxu1 %v1884_v0  ;;  %v1629_v8 = vpack.c.bf16 %v566_v7, %v565_v6  ;;  %v575_v6 = vld [vmem:[#allocation2 + $0x3f8] sm:$0xff]  ;;  %v576_v7 = vld [vmem:[#allocation2 + $0x400] sm:$0xff] }
 0x196   :  { %1568 = vmatprep.subr.bf16.mxu0 %v1567_v9  ;;  %v1207_v9 = vld [vmem:[#allocation2 + $0x1b8] ss:$0 sm:$0xff] }
 0x197   :  { %1570 = vmatpush3.bf16.msra.mxu0 %v1569_v14  ;;  %v383_v14 = vld [vmem:[#allocation2 + $0x2c8] sm:$0xff] }
 0x198   :  { %1528 = vmatpush1.bf16.msra.mxu1 %v1527_v12  ;;  %v378_v12 = vld [vmem:[#allocation2 + $0x2a0] sm:$0xff] }
 0x199   :  { %1529 = vmatprep.subr.bf16.mxu1 %v1884_v0 }
 0x19c   :  { %1531 = vmatpush1.bf16.msra.mxu1 %v1530_v15  ;;  %v1571_v15 = vpack.c.bf16 %v379_v13, %v378_v12  ;;  %v382_v13 = vld [vmem:[#allocation2 + $0x2c0] sm:$0xff] }
 0x19d   :  { %1532 = vmatprep.subr.bf16.mxu1 %v1884_v0 }
 0x19e   :  { %1572 = vmatprep.subr.bf16.mxu0 %v1571_v15 }
 0x1a0   :  { %1534 = vmatpush1.bf16.msra.mxu1 %v1533_v18 }
 0x1a1   :  { %1535 = vmatprep.subr.bf16.mxu1 %v1884_v0 }
 0x1a4   :  { %1537 = vmatpush1.bf16.msra.mxu1 %v1536_v21  ;;  %v363_v21 = vld [vmem:[#allocation2 + $0x228] sm:$0xff] }
 0x1a5   :  { %1538 = vmatprep.subr.bf16.mxu1 %v1884_v0  ;;  %v1573_v22 = vpack.c.bf16 %v363_v21, %v362_v20  ;;  %v385_v20 = vld [vmem:[#allocation2 + $0x2d8] sm:$0xff] }
 0x1a7   :  { %1574 = vmatpush3.bf16.msra.mxu0 %v1573_v22  ;;  %v386_v22 = vld [vmem:[#allocation2 + $0x2e0] sm:$0xff] }
 0x1a8   :  { %1540 = vmatpush1.bf16.msra.mxu1 %v1539_v24  ;;  %v381_v24 = vld [vmem:[#allocation2 + $0x2b8] sm:$0xff] }
 0x1a9   :  { %1541 = vmatprep.subr.bf16.mxu1 %v1884_v0  ;;  %v1575_v25 = vpack.c.bf16 %v381_v24, %v380_v23  ;;  %v387_v23 = vld [vmem:[#allocation2 + $0x2e8] sm:$0xff] }
 0x1aa   :  { %v1586_v24 = vpack.c.bf16 %v387_v23, %v386_v22 }
 0x1ab   :  { %1576 = vmatprep.subr.bf16.mxu0 %v1575_v25  ;;  %v388_v25 = vld [vmem:[#allocation2 + $0x2f0] sm:$0xff] }
 0x1ac   :  { %1543 = vmatpush1.bf16.msra.mxu1 %v1542_v27  ;;  %v365_v27 = vld [vmem:[#allocation2 + $0x238] sm:$0xff] }
 0x1ad   :  { %1544 = vmatprep.subr.bf16.mxu1 %v1884_v0  ;;  %v1577_v28 = vpack.c.bf16 %v365_v27, %v364_v26  ;;  %v389_v26 = vld [vmem:[#allocation2 + $0x2f8] sm:$0xff] }
 0x1ae   :  { %v1589_v27 = vpack.c.bf16 %v389_v26, %v388_v25  ;;  %v582_v25 = vld [vmem:[#allocation2 + $0x430] sm:$0xff] }
 0x1af   :  { %1578 = vmatpush3.bf16.msra.mxu0 %v1577_v28  ;;  %v390_v28 = vld [vmem:[#allocation2 + $0x300] sm:$0xff] }
 0x1b0   :  { %1546 = vmatpush1.bf16.msra.mxu1 %v1545_v30  ;;  %1579 = vmatprep.subr.bf16.mxu0 %v1884_v0  ;;  %v602_v30 = vld [vmem:[#allocation2 + $0x4d0] sm:$0xff] }
 0x1b1   :  { %v1603_v32 = vpack.c.bf16 %v602_v30, %v601_v29  ;;  %v391_v29 = vld [vmem:[#allocation2 + $0x308] sm:$0xff] }
 0x1b2   :  { %v1592_v30 = vpack.c.bf16 %v391_v29, %v390_v28  ;;  %v632_v28 = vld [vmem:[#allocation2 + $0x5c0] sm:$0xff] }
 0x1b3   :  { %1604 = vmatprep.subr.bf16.mxu1 %v1603_v32  ;;  %v393_v32 = vld [vmem:[#allocation2 + $0x318] sm:$0xff] }
 0x1b4   :  { %v1595_v33 = vpack.c.bf16 %v393_v32, %v392_v31  ;;  %v584_v31 = vld [vmem:[#allocation2 + $0x440] sm:$0xff] }
 0x256   :  { %v220_v49 = vpop.f32.mrb[0].mxu1 }
 0x257   :  { %v221_v52 = vadd.f32 %v1205_v44, %v220_v49  ;;  %v1433_v53 = vpop.f32.mrb[1].mxu1  ;;  %v557_v44 = vld [vmem:[#allocation2 + $0x368] sm:$0xff]  ;;  %v1615_v49 = vpack.c.bf16 %v608_v47, %v607_v46  ;;  %v568_v46 = vld [vmem:[#allocation2 + $0x3c0] sm:$0xff] }
 0x258   :  { %v1613_v48 = vpack.c.bf16 %v558_v45, %v557_v44  ;;  %v610_v53 = vld [vmem:[#allocation2 + $0x510] sm:$0xff]  ;;  %v567_v45 = vld [vmem:[#allocation2 + $0x3b8] sm:$0xff] }
 0x259   :  { %v225_v55 = vmul.f32 0.2, %v221_v52  ;;  %vm224_vm6 = vcmp.ge.f32.partialorder %v221_v52, 0.0  ;;  %v1633_v47 = vpack.c.bf16 %v568_v46, %v567_v45 }
 0x25b   :  { %v226_v61 = vsel %vm224_vm6, %v221_v52, %v225_v55  ;;  %v609_v52 = vld [vmem:[#allocation2 + $0x508] sm:$0xff] }
 0x25c   :  { %234 = vrot.lane.b32.xlu1 %v226_v61, %s1888_s23  ;;  %v231_v62 = vrot.slane %v226_v61, 7  ;;  %v228_v16 = vrot.slane %v226_v61, 1  ;;  %v1619_v55 = vpack.c.bf16 %v610_v53, %v609_v52  ;;  %v1623_v61 = vpack.c.bf16 %v612_v59, %v611_v58  ;;  %v619_v52 = vld [vmem:[#allocation2 + $0x558] sm:$0xff]  ;;  %v620_v53 = vld [vmem:[#allocation2 + $0x560] sm:$0xff]  ;;  %v621_v58 = vld [vmem:[#allocation2 + $0x568] sm:$0xff] }
 0x25d   :  { %v622_v59 = vld [vmem:[#allocation2 + $0x570] sm:$0xff] }
 0x25e   :  { %v233_v5 = vsel %vm120_vm1, 0.0, %v231_v62  ;;  %v230_v18 = vsel %vm116_vm2, %v228_v16, 0.0  ;;  %v563_v62 = vld [vmem:[#allocation2 + $0x398] sm:$0xff] }
 0x25f   :  { %1208 = vmatprep.mubr.msk.f32.mxu1 %vm131_vm4, %v233_v5  ;;  %v1625_v4 = vpack.c.bf16 %v564_v63, %v563_v62  ;;  %v1627_v5 = vpack.c.bf16 %v614_v3, %v613_v2  ;;  %v573_v62 = vld [vmem:[#allocation2 + $0x3e8] sm:$0xff]  ;;  %v574_v63 = vld [vmem:[#allocation2 + $0x3f0] sm:$0xff]  ;;  %v623_v2 = vld [vmem:[#allocation2 + $0x578] sm:$0xff] }
 0x260   :  { %v624_v3 = vld [vmem:[#allocation2 + $0x580] sm:$0xff] }
 0x2ce   :  { %v235_v17 = vpop.permute.xlu1 %234 }
 0x2cf   :  { %v237_v19 = vsel %vm131_vm4, %v230_v18, %v235_v17  ;;  %v1580_v17 = vpack.c.bf16 %v383_v14, %v382_v13  ;;  %v578_v13 = vld [vmem:[#allocation2 + $0x410] sm:$0xff]  ;;  %v627_v14 = vld [vmem:[#allocation2 + $0x598] sm:$0xff] }
 0x2d0   :  { %335 = vmatmul.mubr.f32.vlgmr.msra.gmra.mrb[2].mxu1 %v237_v19  ;;  %v384_v19 = vld [vmem:[#allocation2 + $0x2d0] sm:$0xff] }
 0x2d1   :  { %1606 = vmatpush1.bf16.msra.mxu1 %v1605_v36  ;;  %v1583_v21 = vpack.c.bf16 %v385_v20, %v384_v19  ;;  %v1598_v36 = vpack.c.bf16 %v395_v35, %v394_v34  ;;  %v580_v19 = vld [vmem:[#allocation2 + $0x420] sm:$0xff]  ;;  %v629_v20 = vld [vmem:[#allocation2 + $0x5a8] sm:$0xff]  ;;  %v634_v34 = vld [vmem:[#allocation2 + $0x5d0] sm:$0xff] }
 0x2d2   :  { %1608 = vmatprep.subr.bf16.mxu1 %v1607_v37  ;;  %v396_v37 = vld [vmem:[#allocation2 + $0x330] sm:$0xff] }
 0x2d3   :  { %v1601_v39 = vpack.c.bf16 %v397_v38, %v396_v37  ;;  %v824_v37 = vld [vmem:[#allocation2 + $0x6e0] sm:$0xff]  ;;  %v807_v38 = vld [vmem:[#allocation2 + $0x658] sm:$0xff] }
 0x2d5   :  { %1610 = vmatpush1.bf16.msra.mxu1 %v1609_v42  ;;  %v615_v42 = vld [vmem:[#allocation2 + $0x538] sm:$0xff] }
 0x2d6   :  { %1612 = vmatprep.subr.bf16.mxu1 %v1611_v43  ;;  %v616_v43 = vld [vmem:[#allocation2 + $0x540] sm:$0xff] }
 0x2d7   :  { %v1631_v44 = vpack.c.bf16 %v616_v43, %v615_v42  ;;  %v825_v42 = vld [vmem:[#allocation2 + $0x6e8] sm:$0xff]  ;;  %v826_v43 = vld [vmem:[#allocation2 + $0x6f0] sm:$0xff] }
 0x2d9   :  { %1614 = vmatpush1.bf16.msra.mxu1 %v1613_v48  ;;  %v617_v48 = vld [vmem:[#allocation2 + $0x548] sm:$0xff] }
 0x2da   :  { %1616 = vmatprep.subr.bf16.mxu1 %v1615_v49  ;;  %v618_v49 = vld [vmem:[#allocation2 + $0x550] sm:$0xff] }
 0x2dd   :  { %1618 = vmatpush1.bf16.msra.mxu1 %v1617_v54  ;;  %v1637_v54 = vpack.c.bf16 %v570_v51, %v569_v50  ;;  %v1786_v50 = vpack.i.bf16 %v826_v43, %v825_v42 }
 0x2de   :  { %1620 = vmatprep.subr.bf16.mxu1 %v1619_v55  ;;  %v1639_v55 = vpack.c.bf16 %v620_v53, %v619_v52  ;;  %v827_v52 = vld [vmem:[#allocation2 + $0x6f8] sm:$0xff]  ;;  %v828_v53 = vld [vmem:[#allocation2 + $0x700] sm:$0xff] }
 0x2e1   :  { %1622 = vmatpush1.bf16.msra.mxu1 %v1621_v60  ;;  %v1641_v60 = vpack.c.bf16 %v572_v57, %v571_v56  ;;  %v1707_v56 = vpack.c.bf16 %v828_v53, %v827_v52  ;;  %v1796_v57 = vpack.i.bf16 %v828_v53, %v827_v52 }
 0x2e2   :  { %1624 = vmatprep.subr.bf16.mxu1 %v1623_v61  ;;  %v1643_v61 = vpack.c.bf16 %v622_v59, %v621_v58 }
 0x2e5   :  { %1626 = vmatpush1.bf16.msra.mxu1 %v1625_v4  ;;  %v1645_v4 = vpack.c.bf16 %v574_v63, %v573_v62  ;;  %v813_v62 = vld [vmem:[#allocation2 + $0x688] sm:$0xff]  ;;  %v814_v63 = vld [vmem:[#allocation2 + $0x690] sm:$0xff] }
 0x2e6   :  { %1628 = vmatprep.subr.bf16.mxu1 %v1627_v5  ;;  %v1647_v5 = vpack.c.bf16 %v624_v3, %v623_v2  ;;  %v1978_v3 = vld [vmem:[#allocation2 + $0x6c8] sm:$0xff] }
 0x2e9   :  { %1630 = vmatpush1.bf16.msra.mxu1 %v1629_v8  ;;  %v625_v8 = vld [vmem:[#allocation2 + $0x588] sm:$0xff] }
 0x2ea   :  { %1632 = vmatprep.subr.bf16.mxu1 %v1631_v44 }
 0x2ed   :  { %1634 = vmatpush1.bf16.msra.mxu1 %v1633_v47  ;;  %v809_v47 = vld [vmem:[#allocation2 + $0x668] sm:$0xff] }
 0x3a3   :  { %v336_v10 = vpop.f32.mrb[2].mxu1 }
 0x3a4   :  { %v337_v11 = vadd.f32 %v1207_v9, %v336_v10  ;;  %v338_v12 = vpop.f32.mrb[3].mxu1  ;;  %v626_v9 = vld [vmem:[#allocation2 + $0x590] sm:$0xff]  ;;  %v1649_v10 = vpack.c.bf16 %v576_v7, %v575_v6  ;;  %v1811_v7 = vpack.i.bf16 %v814_v63, %v813_v62 }
 0x3a5   :  { %v577_v12 = vld [vmem:[#allocation2 + $0x408] sm:$0xff] }
 0x3a6   :  { %v341_v15 = vmul.f32 0.2, %v337_v11  ;;  %vm340_vm7 = vcmp.ge.f32.partialorder %v337_v11, 0.0 }
 0x3a8   :  { %v342_v16 = vsel %vm340_vm7, %v337_v11, %v341_v15  ;;  %v1651_v11 = vpack.c.bf16 %v626_v9, %v625_v8  ;;  %v628_v15 = vld [vmem:[#allocation2 + $0x5a0] sm:$0xff]  ;;  %v1713_v8 = vpack.c.bf16 %v814_v63, %v813_v62  ;;  %v831_v9 = vld [vmem:[#allocation2 + $0x718] sm:$0xff] }
 0x3a9   :  { %v344_v18 = vrot.slane %v342_v16, 1  ;;  %467 = vmatprep.mubr.f32.mxu0 %v342_v16  ;;  %v347_v41 = vrot.slane %v342_v16, 7  ;;  %v1653_v16 = vpack.c.bf16 %v578_v13, %v577_v12  ;;  %v816_v12 = vld [vmem:[#allocation2 + $0x6a0] sm:$0xff]  ;;  %v639_v62 = vld [vmem:[#allocation2 + $0x5f8] sm:$0xff] }
 0x3aa   :  { %v640_v63 = vld [vmem:[#allocation2 + $0x600] sm:$0xff] }
 0x3ab   :  { %1210 = vmatmul.mubr.msk.f32.vlgmr.msra.gmra.mrb[2].mxu0 %vm116_vm2, %v344_v18  ;;  %v579_v18 = vld [vmem:[#allocation2 + $0x418] sm:$0xff] }
 0x3ac   :  { %1581 = vmatpush3.bf16.msra.mxu0 %v1580_v17  ;;  %1466 = vmatprep.mubr.msk.f32.mxu0 %vm1885_vm0, %v1886_v1  ;;  %v1655_v17 = vpack.c.bf16 %v628_v15, %v627_v14  ;;  %v1657_v22 = vpack.c.bf16 %v580_v19, %v579_v18  ;;  %v834_v18 = vld [vmem:[#allocation2 + $0x730] sm:$0xff]  ;;  %v817_v19 = vld [vmem:[#allocation2 + $0x6a8] sm:$0xff] }
 0x3ad   :  { %1582 = vmatprep.subr.bf16.mxu0 %v1884_v0 }
 0x3b0   :  { %1584 = vmatpush3.bf16.msra.mxu0 %v1583_v21  ;;  %v630_v21 = vld [vmem:[#allocation2 + $0x5b0] sm:$0xff] }
 0x3b1   :  { %1585 = vmatprep.subr.bf16.mxu0 %v1884_v0  ;;  %v1659_v23 = vpack.c.bf16 %v630_v21, %v629_v20  ;;  %v818_v20 = vld [vmem:[#allocation2 + $0x6b0] sm:$0xff] }
 0x3b4   :  { %1587 = vmatpush3.bf16.msra.mxu0 %v1586_v24  ;;  %v581_v24 = vld [vmem:[#allocation2 + $0x428] sm:$0xff] }
 0x3b5   :  { %1588 = vmatprep.subr.bf16.mxu0 %v1884_v0  ;;  %v1661_v26 = vpack.c.bf16 %v582_v25, %v581_v24  ;;  %v1721_v24 = vpack.c.bf16 %v818_v20, %v817_v19  ;;  %v835_v25 = vld [vmem:[#allocation2 + $0x738] sm:$0xff] }
 0x3b8   :  { %1590 = vmatpush3.bf16.msra.mxu0 %v1589_v27  ;;  %v631_v27 = vld [vmem:[#allocation2 + $0x5b8] sm:$0xff] }
 0x3b9   :  { %1591 = vmatprep.subr.bf16.mxu0 %v1884_v0  ;;  %v1663_v29 = vpack.c.bf16 %v632_v28, %v631_v27  ;;  %v819_v27 = vld [vmem:[#allocation2 + $0x6b8] sm:$0xff]  ;;  %v820_v28 = vld [vmem:[#allocation2 + $0x6c0] sm:$0xff] }
 0x3bc   :  { %1593 = vmatpush3.bf16.msra.mxu0 %v1592_v30  ;;  %v583_v30 = vld [vmem:[#allocation2 + $0x438] sm:$0xff] }
 0x3bd   :  { %1594 = vmatprep.subr.bf16.mxu0 %v1884_v0  ;;  %v1665_v32 = vpack.c.bf16 %v584_v31, %v583_v30  ;;  %v1841_v31 = vpack.i.bf16 %v820_v28, %v819_v27 }
 0x3c0   :  { %1596 = vmatpush3.bf16.msra.mxu0 %v1595_v33  ;;  %v633_v33 = vld [vmem:[#allocation2 + $0x5c8] sm:$0xff] }
 0x3c1   :  { %1597 = vmatprep.subr.bf16.mxu0 %v1884_v0  ;;  %v1667_v35 = vpack.c.bf16 %v634_v34, %v633_v33  ;;  %v1992_v33 = vld [vmem:[#allocation2 + $0x748] sm:$0xff]  ;;  %v1994_v34 = vld [vmem:[#allocation2 + $0x750] sm:$0xff] }
 0x3c4   :  { %1599 = vmatpush3.bf16.msra.mxu0 %v1598_v36  ;;  %v823_v36 = vld [vmem:[#allocation2 + $0x6d8] sm:$0xff] }
 0x3c5   :  { %1600 = vmatprep.subr.bf16.mxu0 %v1884_v0  ;;  %v1635_v0 = vpack.c.bf16 %v618_v49, %v617_v48  ;;  %v1699_v44 = vpack.c.bf16 %v824_v37, %v823_v36  ;;  %v810_v48 = vld [vmem:[#allocation2 + $0x670] sm:$0xff]  ;;  %v1703_v49 = vpack.c.bf16 %v826_v43, %v825_v42 }
 0x3c6   :  { %v1705_v51 = vpack.c.bf16 %v810_v48, %v809_v47 }
 0x3c7   :  { %1636 = vmatprep.subr.bf16.mxu1 %v1635_v0  ;;  %v1791_v0 = vpack.i.bf16 %v810_v48, %v809_v47  ;;  %v586_v47 = vld [vmem:[#allocation2 + $0x450] sm:$0xff] }
 0x3c8   :  { %1602 = vmatpush3.bf16.msra.mxu0 %v1601_v39  ;;  %1638 = vmatpush1.bf16.msra.mxu1 %v1637_v54  ;;  %v1776_v39 = vpack.i.bf16 %v824_v37, %v823_v36  ;;  %v811_v54 = vld [vmem:[#allocation2 + $0x678] sm:$0xff] }
 0x3c9   :  { %1640 = vmatprep.subr.bf16.mxu1 %v1639_v55  ;;  %1700 = vmatprep.subr.bf16.mxu0 %v1699_v44  ;;  %v812_v55 = vld [vmem:[#allocation2 + $0x680] sm:$0xff] }
 0x3ca   :  { %1777 = vrot.lane.b32.xlu1 %v1776_v39, %s1889_s24  ;;  %v1801_v58 = vpack.i.bf16 %v812_v55, %v811_v54  ;;  %v1709_v59 = vpack.c.bf16 %v812_v55, %v811_v54  ;;  %v587_v54 = vld [vmem:[#allocation2 + $0x458] sm:$0xff]  ;;  %v588_v55 = vld [vmem:[#allocation2 + $0x460] sm:$0xff] }
 0x3cb   :  { %1467 = vmatmul.mubr.msk.f32.vlgmr.msra.gmra.mrb[4].mxu0 %vm1968_vm8, %v347_v41  ;;  %v808_v41 = vld [vmem:[#allocation2 + $0x660] sm:$0xff] }
 0x3cc   :  { %1642 = vmatpush1.bf16.msra.mxu1 %v1641_v60  ;;  %v1781_v45 = vpack.i.bf16 %v808_v41, %v807_v38  ;;  %v1701_v46 = vpack.c.bf16 %v808_v41, %v807_v38  ;;  %v829_v60 = vld [vmem:[#allocation2 + $0x708] sm:$0xff]  ;;  %v1209_v41 = vld [vmem:[#allocation2 + $0x340] ss:$0 sm:$0xff] }
 0x3cd   :  { %1644 = vmatprep.subr.bf16.mxu1 %v1643_v61  ;;  %v830_v61 = vld [vmem:[#allocation2 + $0x710] sm:$0xff] }
 0x3ce   :  { %1782 = vrot.lane.b32.xlu0 %v1781_v45, %s1889_s24  ;;  %1702 = vmatpush3.bf16.msra.mxu0 %v1701_v46  ;;  %v1711_v2 = vpack.c.bf16 %v830_v61, %v829_v60  ;;  %v585_v46 = vld [vmem:[#allocation2 + $0x448] sm:$0xff] }
 0x3cf   :  { %1704 = vmatprep.subr.bf16.mxu0 %v1703_v49  ;;  %1787 = vrot.lane.b32.xlu1 %v1786_v50, %s1889_s24  ;;  %v635_v49 = vld [vmem:[#allocation2 + $0x5d8] sm:$0xff]  ;;  %v636_v50 = vld [vmem:[#allocation2 + $0x5e0] sm:$0xff] }
 0x3d0   :  { %1646 = vmatpush1.bf16.msra.mxu1 %v1645_v4  ;;  %v1980_v4 = vld [vmem:[#allocation2 + $0x6d0] sm:$0xff]  ;;  %v1671_v53 = vpack.c.bf16 %v636_v50, %v635_v49 }
 0x3d1   :  { %1648 = vmatprep.subr.bf16.mxu1 %v1647_v5  ;;  %v1806_v5 = vpack.i.bf16 %v830_v61, %v829_v60  ;;  %v1729_v6 = vpack.c.bf16 %v1980_v4, %v1978_v3  ;;  %v1851_v36 = vpack.i.bf16 %v1980_v4, %v1978_v3  ;;  %v589_v60 = vld [vmem:[#allocation2 + $0x468] sm:$0xff]  ;;  %v590_v61 = vld [vmem:[#allocation2 + $0x470] sm:$0xff]  ;;  %v2021_v4 = vld [vmem:[%s2031_s1] sm:$0xff] }
 0x3d2   :  { %1792 = vrot.lane.b32.xlu0 %v1791_v0, %s1889_s24  ;;  %1706 = vmatpush3.bf16.msra.mxu0 %v1705_v51  ;;  %v1669_v51 = vpack.c.bf16 %v586_v47, %v585_v46 }
 0x3d3   :  { %1708 = vmatprep.subr.bf16.mxu0 %v1707_v56  ;;  %1797 = vrot.lane.b32.xlu1 %v1796_v57, %s1889_s24  ;;  %v637_v56 = vld [vmem:[#allocation2 + $0x5e8] sm:$0xff]  ;;  %v638_v57 = vld [vmem:[#allocation2 + $0x5f0] sm:$0xff] }
 0x3d4   :  { %1650 = vmatpush1.bf16.msra.mxu1 %v1649_v10  ;;  %v832_v10 = vld [vmem:[#allocation2 + $0x720] sm:$0xff] }
 0x3d5   :  { %1652 = vmatprep.subr.bf16.mxu1 %v1651_v11  ;;  %v815_v11 = vld [vmem:[#allocation2 + $0x698] sm:$0xff]  ;;  %v1715_v13 = vpack.c.bf16 %v832_v10, %v831_v9  ;;  %v1816_v14 = vpack.i.bf16 %v832_v10, %v831_v9  ;;  %v641_v9 = vld [vmem:[#allocation2 + $0x608] sm:$0xff]  ;;  %v642_v10 = vld [vmem:[#allocation2 + $0x610] sm:$0xff] }
 0x3d6   :  { %1802 = vrot.lane.b32.xlu0 %v1801_v58, %s1889_s24  ;;  %1710 = vmatpush3.bf16.msra.mxu0 %v1709_v59  ;;  %v1821_v15 = vpack.i.bf16 %v816_v12, %v815_v11  ;;  %v1673_v58 = vpack.c.bf16 %v588_v55, %v587_v54  ;;  %v1675_v59 = vpack.c.bf16 %v638_v57, %v637_v56 }
 0x3d7   :  { %1712 = vmatprep.subr.bf16.mxu0 %v1711_v2  ;;  %1807 = vrot.lane.b32.xlu1 %v1806_v5, %s1889_s24  ;;  %v1677_v2 = vpack.c.bf16 %v590_v61, %v589_v60  ;;  %v1679_v5 = vpack.c.bf16 %v640_v63, %v639_v62  ;;  %v916_v60 = vcombine.high %v2021_v4, %v2021_v4 }
 0x3d8   :  { %1654 = vmatpush1.bf16.msra.mxu1 %v1653_v16  ;;  %v1717_v16 = vpack.c.bf16 %v816_v12, %v815_v11  ;;  %v1683_v12 = vpack.c.bf16 %v642_v10, %v641_v9 }
 0x3d9   :  { %1656 = vmatprep.subr.bf16.mxu1 %v1655_v17  ;;  %v833_v17 = vld [vmem:[#allocation2 + $0x728] sm:$0xff] }
 0x3da   :  { %1812 = vrot.lane.b32.xlu0 %v1811_v7, %s1889_s24  ;;  %1714 = vmatpush3.bf16.msra.mxu0 %v1713_v8  ;;  %v1719_v21 = vpack.c.bf16 %v834_v18, %v833_v17  ;;  %v591_v7 = vld [vmem:[#allocation2 + $0x478] sm:$0xff]  ;;  %v592_v8 = vld [vmem:[#allocation2 + $0x480] sm:$0xff] }
 0x3db   :  { %1716 = vmatprep.subr.bf16.mxu0 %v1715_v13  ;;  %1817 = vrot.lane.b32.xlu1 %v1816_v14, %s1889_s24  ;;  %v1681_v11 = vpack.c.bf16 %v592_v8, %v591_v7  ;;  %v593_v13 = vld [vmem:[#allocation2 + $0x488] sm:$0xff]  ;;  %v594_v14 = vld [vmem:[#allocation2 + $0x490] sm:$0xff] }
 0x3dc   :  { %1658 = vmatpush1.bf16.msra.mxu1 %v1657_v22  ;;  %v1826_v22 = vpack.i.bf16 %v834_v18, %v833_v17  ;;  %v1685_v17 = vpack.c.bf16 %v594_v14, %v593_v13 }
 0x3dd   :  { %1660 = vmatprep.subr.bf16.mxu1 %v1659_v23  ;;  %v1831_v23 = vpack.i.bf16 %v818_v20, %v817_v19  ;;  %v595_v19 = vld [vmem:[#allocation2 + $0x498] sm:$0xff]  ;;  %v596_v20 = vld [vmem:[#allocation2 + $0x4a0] sm:$0xff] }
 0x3de   :  { %1822 = vrot.lane.b32.xlu0 %v1821_v15, %s1889_s24  ;;  %1718 = vmatpush3.bf16.msra.mxu0 %v1717_v16  ;;  %v643_v15 = vld [vmem:[#allocation2 + $0x618] sm:$0xff]  ;;  %v644_v16 = vld [vmem:[#allocation2 + $0x620] sm:$0xff] }
 0x3df   :  { %1720 = vmatprep.subr.bf16.mxu0 %v1719_v21  ;;  %1827 = vrot.lane.b32.xlu1 %v1826_v22, %s1889_s24  ;;  %v1687_v18 = vpack.c.bf16 %v644_v16, %v643_v15  ;;  %v645_v21 = vld [vmem:[#allocation2 + $0x628] sm:$0xff]  ;;  %v646_v22 = vld [vmem:[#allocation2 + $0x630] sm:$0xff] }
 0x3e0   :  { %1662 = vmatpush1.bf16.msra.mxu1 %v1661_v26  ;;  %v836_v26 = vld [vmem:[#allocation2 + $0x740] sm:$0xff] }
 0x3e1   :  { %1664 = vmatprep.subr.bf16.mxu1 %v1663_v29  ;;  %v1723_v29 = vpack.c.bf16 %v836_v26, %v835_v25  ;;  %v1836_v30 = vpack.i.bf16 %v836_v26, %v835_v25  ;;  %v597_v25 = vld [vmem:[#allocation2 + $0x4a8] sm:$0xff]  ;;  %v598_v26 = vld [vmem:[#allocation2 + $0x4b0] sm:$0xff] }
 0x3e2   :  { %1832 = vrot.lane.b32.xlu0 %v1831_v23, %s1889_s24  ;;  %1722 = vmatpush3.bf16.msra.mxu0 %v1721_v24  ;;  %v1689_v23 = vpack.c.bf16 %v596_v20, %v595_v19  ;;  %v1691_v24 = vpack.c.bf16 %v646_v22, %v645_v21 }
 0x3e3   :  { %1724 = vmatprep.subr.bf16.mxu0 %v1723_v29  ;;  %1837 = vrot.lane.b32.xlu1 %v1836_v30, %s1889_s24  ;;  %v1693_v29 = vpack.c.bf16 %v598_v26, %v597_v25 }
 0x3e4   :  { %1666 = vmatpush1.bf16.msra.mxu1 %v1665_v32  ;;  %v1725_v32 = vpack.c.bf16 %v820_v28, %v819_v27  ;;  %v647_v27 = vld [vmem:[#allocation2 + $0x638] sm:$0xff]  ;;  %v648_v28 = vld [vmem:[#allocation2 + $0x640] sm:$0xff] }
 0x3e5   :  { %1668 = vmatprep.subr.bf16.mxu1 %v1667_v35  ;;  %v1846_v35 = vpack.i.bf16 %v1994_v34, %v1992_v33  ;;  %v1695_v30 = vpack.c.bf16 %v648_v28, %v647_v27 }
 0x3e6   :  { %1842 = vrot.lane.b32.xlu0 %v1841_v31, %s1889_s24  ;;  %1726 = vmatpush3.bf16.msra.mxu0 %v1725_v32  ;;  %v599_v31 = vld [vmem:[#allocation2 + $0x4b8] sm:$0xff]  ;;  %v600_v32 = vld [vmem:[#allocation2 + $0x4c0] sm:$0xff] }
 0x3e7   :  { %1847 = vrot.lane.b32.xlu1 %v1846_v35, %s1889_s24  ;;  %v1697_v35 = vpack.c.bf16 %v600_v32, %v599_v31 }
 0x3ea   :  { %1852 = vrot.lane.b32.xlu0 %v1851_v36, %s1889_s24 }
 0x47e   :  { %v1282_v37 = vpop.f32.mrb[2].mxu0 }
 0x47f   :  { %v1283_v38 = vpop.f32.mrb[3].mxu0 }
 0x480   :  { %v1284_v39 = vadd.f32 %v1283_v38, %v1282_v37  ;;  %v1727_v37 = vpack.c.bf16 %v1994_v34, %v1992_v33  ;;  %v1778_v38 = vpop.permute.xlu1 %1777 }
 0x482   :  { %v470_v42 = vadd.f32 %v1284_v39, %v1209_v41  ;;  %v1780_v39 = vunpack.i.h.bf16 %v1778_v38  ;;  %v1779_v41 = vunpack.i.l.bf16 %v1778_v38  ;;  %1728 = vmatprep.subr.bf16.mxu0 %v1727_v37 }
 0x483   :  { %1730 = vmatpush3.bf16.msra.mxu0 %v1729_v6 }
 0x49e   :  { %v539_v43 = vpop.f32.mrb[4].mxu0 }
 0x49f   :  { %v540_v44 = vadd.f32 %v539_v43, %v470_v42  ;;  %v1468_v45 = vpop.f32.mrb[5].mxu0  ;;  %v1731_v42 = vpack.c.bf16 %v1780_v39, %v1779_v41  ;;  %v1783_v43 = vpop.permute.xlu0 %1782 }
 0x4a1   :  { %v544_v48 = vmul.f32 0.2, %v540_v44  ;;  %vm543_vm9 = vcmp.ge.f32.partialorder %v540_v44, 0.0  ;;  %1732 = vmatprep.subr.bf16.mxu0 %v1731_v42 }
 0x4a3   :  { %v2004_v0 = vsel %vm543_vm9, %v540_v44, %v544_v48  ;;  %v1788_v44 = vpop.permute.xlu1 %1787  ;;  %v1793_v45 = vpop.permute.xlu0 %1792  ;;  %v1214_v48 = vld [vmem:[#allocation2 + $0x650] ss:$0 sm:$0xff] }
 0x4a4   :  { %v547_v52 = vrot.slane %v2004_v0, 1  ;;  %723 = vmatprep.mubr.f32.mxu1 %v2004_v0  ;;  %v550_v36 = vrot.slane %v2004_v0, 7  ;;  %v1785_v0 = vunpack.i.h.bf16 %v1783_v43  ;;  %v1789_v54 = vunpack.i.l.bf16 %v1788_v44 }
 0x4a5   :  { %v1795_v57 = vunpack.i.h.bf16 %v1793_v45 }
 0x4a6   :  { %1215 = vmatmul.mubr.msk.f32.vlgmr.msra.gmra.mrb[4].mxu1 %vm116_vm2, %v547_v52 }
 0x4a7   :  { %1670 = vmatpush1.bf16.msra.mxu1 %v1669_v51  ;;  %794 = vmatprep.mubr.f32.mxu1 %v1886_v1  ;;  %v1798_v46 = vpop.permute.xlu1 %1797  ;;  %v1803_v47 = vpop.permute.xlu0 %1802  ;;  %v1784_v51 = vunpack.i.l.bf16 %v1783_v43 }
 0x4a8   :  { %1672 = vmatprep.subr.bf16.mxu1 %v1671_v53  ;;  %v1790_v53 = vunpack.i.h.bf16 %v1788_v44  ;;  %v1800_v63 = vunpack.i.h.bf16 %v1798_v46  ;;  %v1805_v9 = vunpack.i.h.bf16 %v1803_v47  ;;  %v1804_v10 = vunpack.i.l.bf16 %v1803_v47 }
 0x4a9   :  { %v1733_v56 = vpack.c.bf16 %v1785_v0, %v1784_v51 }
 0x4aa   :  { %v1735_v61 = vpack.c.bf16 %v1790_v53, %v1789_v54  ;;  %v1741_v15 = vpack.c.bf16 %v1805_v9, %v1804_v10  ;;  %v1218_v53 = vld [vmem:[#allocation2 + $0x758] ss:$0 sm:$0xff] }
 0x4ab   :  { %1674 = vmatpush1.bf16.msra.mxu1 %v1673_v58  ;;  %v1808_v49 = vpop.permute.xlu1 %1807  ;;  %v1813_v3 = vpop.permute.xlu0 %1812  ;;  %v1794_v58 = vunpack.i.l.bf16 %v1793_v45 }
 0x4ac   :  { %1676 = vmatprep.subr.bf16.mxu1 %v1675_v59  ;;  %v1809_v13 = vunpack.i.l.bf16 %v1808_v49  ;;  %v1815_v16 = vunpack.i.h.bf16 %v1813_v3 }
 0x4ad   :  { %v1737_v8 = vpack.c.bf16 %v1795_v57, %v1794_v58 }
 0x4af   :  { %1678 = vmatpush1.bf16.msra.mxu1 %v1677_v2  ;;  %v1818_v59 = vpop.permute.xlu1 %1817  ;;  %v1799_v2 = vunpack.i.l.bf16 %v1798_v46  ;;  %v1823_v7 = vpop.permute.xlu0 %1822 }
 0x4b0   :  { %1680 = vmatprep.subr.bf16.mxu1 %v1679_v5  ;;  %v1820_v19 = vunpack.i.h.bf16 %v1818_v59  ;;  %v1819_v20 = vunpack.i.l.bf16 %v1818_v59 }
 0x4b2   :  { %v1747_v26 = vpack.c.bf16 %v1820_v19, %v1819_v20 }
 0x4b3   :  { %1682 = vmatpush1.bf16.msra.mxu1 %v1681_v11  ;;  %v1739_v11 = vpack.c.bf16 %v1800_v63, %v1799_v2  ;;  %v1828_v14 = vpop.permute.xlu1 %1827  ;;  %v1833_v21 = vpop.permute.xlu0 %1832 }
 0x4b4   :  { %1684 = vmatprep.subr.bf16.mxu1 %v1683_v12  ;;  %v1810_v12 = vunpack.i.h.bf16 %v1808_v49  ;;  %v1830_v27 = vunpack.i.h.bf16 %v1828_v14  ;;  %v1829_v28 = vunpack.i.l.bf16 %v1828_v14  ;;  %v1835_v31 = vunpack.i.h.bf16 %v1833_v21 }
 0x4b5   :  { %v1834_v32 = vunpack.i.l.bf16 %v1833_v21 }
 0x4b7   :  { %1686 = vmatpush1.bf16.msra.mxu1 %v1685_v17  ;;  %v1814_v17 = vunpack.i.l.bf16 %v1813_v3  ;;  %v1838_v25 = vpop.permute.xlu1 %1837  ;;  %v1753_v39 = vpack.c.bf16 %v1835_v31, %v1834_v32 }
 0x4b8   :  { %1688 = vmatprep.subr.bf16.mxu1 %v1687_v18  ;;  %v1743_v18 = vpack.c.bf16 %v1810_v12, %v1809_v13  ;;  %v1839_v37 = vunpack.i.l.bf16 %v1838_v25 }
 0x4b9   :  { %v1745_v22 = vpack.c.bf16 %v1815_v16, %v1814_v17 }
 0x4bb   :  { %1690 = vmatpush1.bf16.msra.mxu1 %v1689_v23  ;;  %v1825_v23 = vunpack.i.h.bf16 %v1823_v7  ;;  %v1848_v38 = vpop.permute.xlu1 %1847 }
 0x4bc   :  { %1692 = vmatprep.subr.bf16.mxu1 %v1691_v24  ;;  %v1824_v24 = vunpack.i.l.bf16 %v1823_v7  ;;  %v1850_v44 = vunpack.i.h.bf16 %v1848_v38  ;;  %v1849_v45 = vunpack.i.l.bf16 %v1848_v38 }
 0x4be   :  { %v1759_v49 = vpack.c.bf16 %v1850_v44, %v1849_v45 }
 0x4bf   :  { %1694 = vmatpush1.bf16.msra.mxu1 %v1693_v29  ;;  %v1843_v29 = vpop.permute.xlu0 %1842 }
 0x4c0   :  { %1696 = vmatprep.subr.bf16.mxu1 %v1695_v30  ;;  %v1749_v30 = vpack.c.bf16 %v1825_v23, %v1824_v24  ;;  %v1845_v41 = vunpack.i.h.bf16 %v1843_v29  ;;  %v1844_v42 = vunpack.i.l.bf16 %v1843_v29 }
 0x4c2   :  { %v1757_v47 = vpack.c.bf16 %v1845_v41, %v1844_v42 }
 0x4c3   :  { %1698 = vmatpush1.bf16.msra.mxu1 %v1697_v35  ;;  %v1751_v35 = vpack.c.bf16 %v1830_v27, %v1829_v28  ;;  %v1853_v46 = vpop.permute.xlu0 %1852 }
 0x4c6   :  { %1217 = vmatmul.mubr.msk.f32.vlgmr.msra.gmra.mrb[4].mxu1 %vm1968_vm8, %v550_v36  ;;  %v1840_v36 = vunpack.i.h.bf16 %v1838_v25 }
 0x4c8   :  { %v1755_v43 = vpack.c.bf16 %v1840_v36, %v1839_v37 }
 0x599   :  { %v796_v50 = vpop.f32.mrb[4].mxu1 }
 0x59a   :  { %v1763_v33 = vadd.f32 %v1213_v40, %v796_v50  ;;  %v798_v34 = vpop.f32.mrb[5].mxu1  ;;  %v1855_v40 = vunpack.i.h.bf16 %v1853_v46 }
 0x59b   :  { %v1764_v52 = vadd.f32 %v1214_v48, %v798_v34  ;;  %v1854_v48 = vunpack.i.l.bf16 %v1853_v46  ;;  %v1118_v34 = vld [vmem:[#allocation2 + $0x760] sm:$0xff] }
 0x59c   :  { %v803_v6 = vmul.f32 0.2, %v1763_v33  ;;  %vm801_vm10 = vcmp.ge.f32.partialorder %v1763_v33, 0.0 }
 0x59d   :  { %v804_v55 = vmul.f32 0.2, %v1764_v52  ;;  %vm802_vm11 = vcmp.ge.f32.partialorder %v1764_v52, 0.0  ;;  %v1761_v50 = vpack.c.bf16 %v1855_v40, %v1854_v48 }
 0x59e   :  { %v805_v5 = vsel %vm801_vm10, %v1763_v33, %v803_v6  ;;  %v1119_v33 = vld [vmem:[#allocation2 + $0x768] sm:$0xff] }
 0x59f   :  { %v806_v62 = vsel %vm802_vm11, %v1764_v52, %v804_v55 }
 0x5a0   :  { %908 = vmatprep.mubr.f32.mxu0 %v806_v62 }
 0x5a1   :  { %909 = vmatmul.mubr.f32.vlgmr.msra.gmra.mrb[6].mxu0 %v805_v5 }
 0x5a2   :  { %1734 = vmatpush3.bf16.msra.mxu0 %v1733_v56  ;;  %1110 = vmatprep.mubr.f32.mxu0 %v916_v60 }
 0x5a3   :  { %1736 = vmatprep.subr.bf16.mxu0 %v1735_v61 }
 0x5a6   :  { %1738 = vmatpush3.bf16.msra.mxu0 %v1737_v8 }
 0x5a7   :  { %1740 = vmatprep.subr.bf16.mxu0 %v1739_v11 }
 0x5aa   :  { %1742 = vmatpush3.bf16.msra.mxu0 %v1741_v15 }
 0x5ab   :  { %1744 = vmatprep.subr.bf16.mxu0 %v1743_v18 }
 0x5ae   :  { %1746 = vmatpush3.bf16.msra.mxu0 %v1745_v22 }
 0x5af   :  { %1748 = vmatprep.subr.bf16.mxu0 %v1747_v26 }
 0x5b2   :  { %1750 = vmatpush3.bf16.msra.mxu0 %v1749_v30 }
 0x5b3   :  { %1752 = vmatprep.subr.bf16.mxu0 %v1751_v35 }
 0x5b6   :  { %1754 = vmatpush3.bf16.msra.mxu0 %v1753_v39 }
 0x5b7   :  { %1756 = vmatprep.subr.bf16.mxu0 %v1755_v43 }
 0x5ba   :  { %1758 = vmatpush3.bf16.msra.mxu0 %v1757_v47 }
 0x5bb   :  { %1760 = vmatprep.subr.bf16.mxu0 %v1759_v49 }
 0x5be   :  { %1762 = vmatpush3.bf16.msra.mxu0 %v1761_v50 }
 0x5bf   :  { %1124 = vmatprep.subr.mxu0 %v1119_v33 }
 0x5c1   :  { %1111 = vmatmul.mubr.f32.vlgmr.msra.gmra.mrb[8].mxu0 %v2021_v4 }
 0x5c2   :  { %1188 = vmatprep.mubr.f32.mxu0 %v1886_v1  ;;  %1125 = vmatpush1.msra.mxu0 %v1118_v34 }
 0x674   :  { %v1334_v0 = vpop.f32.mrb[6].mxu0 }
 0x675   :  { %v1335_v51 = vpop.f32.mrb[7].mxu0 }
 0x676   :  { %v1336_v52 = vadd.f32 %v1335_v51, %v1334_v0 }
 0x678   :  { %v911_v54 = vadd.f32 %v1336_v52, %v1218_v53 }
 0x67a   :  { %v1116_v55 = vmul.f32 %v911_v54, %v911_v54 }
 0x694   :  { %v1369_v3 = vpop.f32.mrb[8].mxu0 }
 0x695   :  { %v1370_v6 = vpop.f32.mrb[9].mxu0 }
 0x696   :  { %v1371_v56 = vadd.f32 %v1370_v6, %v1369_v3 }
 0x698   :  { %v1117_v57 = vmul.f32 %v1371_v56, %v1116_v55 }
 0x69a   :  { %1219 = vmatmul.mubr.msk.f32.vlgmr.msra.gmra.mrb[10].mxu0 %vm1120_vm12, %v1117_v57 }
 0x76d   :  { %v1190_v58 = vpop.f32.mrb[10].mxu0 }
 0x76e   :  { %v1192_v4 = vpop.f32.mrb[11].mxu0 }
 0x76f   :  { %v1197_v59 = vcombine.low %v1190_v58, %v1192_v4 }
 0x771   :  { %1199 = vst [vmem:[%s2032_s2] sm:$0xff] %v1197_v59 }
 0x772   :  { %1204 = vsyncpa [#allocation3], 1 }

</bundles_post_ra>
